<compile_context>
chip_gen: v7x
topology: tpu7x:2x2x1
jax: 0.10.0
libtpu: 0.0.40
codegen_flags: <defaults>
</compile_context>

<pallas_src>
import jax
import jax.numpy as jnp
import numpy as np
from jax import lax
from jax.experimental import pallas as pl
from jax.experimental.pallas import tpu as pltpu


def _conv3x3_rows(win, w, b, out_rows):
    """3x3 conv producing `out_rows` rows from a band that already carries a
    1-row H halo on each side.

    win: (out_rows + 2, W, C) f32
    w:   (3, 3, C, Cout) HWIO, b: (1, 1, Cout)
    W uses reflection padding (W is never tiled, so its borders are true
    image borders).
    """
    # Left/right-neighbor views with a reflected edge column: 2 shifted copies
    # per conv instead of 2 pad-concats + 9 strided slices of a padded tensor.
    wm1 = jnp.concatenate([win[:, 1:2, :], win[:, :-1, :]], axis=1)   # col w-1
    wp1 = jnp.concatenate([win[:, 1:, :], win[:, -2:-1, :]], axis=1)  # col w+1
    taps = (wm1, win, wp1)

    acc = None
    for kh in range(3):
        for kw in range(3):
            # H tap = free leading-axis slice of the halo'd band.
            t = lax.dot_general(
                taps[kw][kh:kh + out_rows], w[kh, kw],
                dimension_numbers=(((2,), (0,)), ((), ())),
                preferred_element_type=jnp.float32)
            acc = t if acc is None else acc + t
    return acc + b


def resnet_block_kernel(xc_ref, xt_ref, xb_ref, w1_ref, b1_ref, w2_ref,
                        b2_ref, o_ref, y1_ref):
    th = xc_ref.shape[1]

    xc = xc_ref[0].astype(jnp.float32)          # (TH, W, C) center rows
    xt = xt_ref[0].astype(jnp.float32)          # (2, W, C)  rows above (clamped)
    xb = xb_ref[0].astype(jnp.float32)          # (2, W, C)  rows below (clamped)
    w1 = w1_ref[...].astype(jnp.float32)        # (3, 3, C, C)
    b1 = b1_ref[...].astype(jnp.float32)        # (1, 1, C)
    w2 = w2_ref[...].astype(jnp.float32)
    b2 = b2_ref[...].astype(jnp.float32)

    # Input band with a 2-row halo on each side (rows s*TH-2 .. s*TH+TH+1).
    win = jnp.concatenate([xt, xc, xb], axis=0)            # (TH+4, W, C)

    # conv1 -> TH+2 rows of conv1 output (rows s*TH-1 .. s*TH+TH), then ReLU.
    y1 = jnp.maximum(_conv3x3_rows(win, w1, b1, th + 2), 0.0)

    # conv2's ReflectionPad2d reflects conv1's OUTPUT at the true image
    # borders (not the block input): fix the out-of-image halo rows.
    y1_ref[...] = y1
    s = pl.program_id(1)

    @pl.when(s == 0)
    def _():                                    # conv1-out row -1 := row 1
        y1_ref[0] = y1_ref[2]

    @pl.when(s == pl.num_programs(1) - 1)
    def _():                                    # conv1-out row H := row H-2
        y1_ref[th + 1] = y1_ref[th - 1]

    y2 = _conv3x3_rows(y1_ref[...], w2, b2, th)            # (TH, W, C)
    o_ref[0] = (xc + y2).astype(o_ref.dtype)               # residual add


def resnet_block_pallas(x_nchw, w1, b1, w2, b2, *, tile_h=8):
    """x_nchw: (N, C, H, W) f32 (PyTorch layout).
    w*: (3, 3, Cin, Cout) HWIO, b*: (Cout,)."""
    x = jnp.transpose(x_nchw, (0, 2, 3, 1))     # NCHW -> NHWC (C on lanes)
    n, h, wd, c = x.shape
    if h % 2 != 0 or h < 4:
        raise ValueError("H must be even and >= 4 for the 2-row halo tiling")

    # Tile height: an even divisor of H (keeps the 2-row halo blocks aligned).
    th = max(2, min(tile_h, h))
    while th > 2 and (h % th != 0 or th % 2 != 0):
        th -= 1
    num_th = h // th
    hb = th // 2                                # halo block index unit = 2 rows

    b1r = b1.reshape(1, 1, c)
    b2r = b2.reshape(1, 1, c)

    center = lambda i, s: (i, s, 0, 0)
    top    = lambda i, s: (i, jnp.maximum(s * hb - 1, 0), 0, 0)
    bottom = lambda i, s: (i, jnp.minimum((s + 1) * hb, h // 2 - 1), 0, 0)
    const4 = lambda i, s: (0, 0, 0, 0)
    const3 = lambda i, s: (0, 0, 0)

    out = pl.pallas_call(
        resnet_block_kernel,
        out_shape=jax.ShapeDtypeStruct((n, h, wd, c), x.dtype),
        grid=(n, num_th),
        in_specs=[
            pl.BlockSpec((1, th, wd, c), center),   # band of output rows
            pl.BlockSpec((1, 2, wd, c), top),       # 2-row halo above (clamped)
            pl.BlockSpec((1, 2, wd, c), bottom),    # 2-row halo below (clamped)
            pl.BlockSpec((3, 3, c, c), const4),     # conv1 weight (stays resident)
            pl.BlockSpec((1, 1, c), const3),        # conv1 bias
            pl.BlockSpec((3, 3, c, c), const4),     # conv2 weight
            pl.BlockSpec((1, 1, c), const3),        # conv2 bias
        ],
        out_specs=pl.BlockSpec((1, th, wd, c), center),
        scratch_shapes=[pltpu.VMEM((th + 2, wd, c), jnp.float32)],
        compiler_params=pltpu.CompilerParams(
            dimension_semantics=("parallel", "parallel"),
            vmem_limit_bytes=32 * 1024 * 1024),
    )(x, x, x, w1, b1r, w2, b2r)
    return jnp.transpose(out, (0, 3, 1, 2))     # NHWC -> NCHW


def _reference(x_nchw, w1, b1, w2, b2):
    """Pure-JAX reference (lax.conv + reflect pad) for a correctness check."""
    x = jnp.transpose(x_nchw, (0, 2, 3, 1))
    dn = ('NHWC', 'HWIO', 'NHWC')

    def conv(t, w, b):
        tp = jnp.pad(t, ((0, 0), (1, 1), (1, 1), (0, 0)), mode='reflect')
        return lax.conv_general_dilated(tp, w, (1, 1), 'VALID',
                                        dimension_numbers=dn) + b

    y = conv(x, w1, b1)
    y = jnp.maximum(y, 0.0)
    y = conv(y, w2, b2)
    return jnp.transpose(x + y, (0, 3, 1, 2))


if __name__ == "__main__":
    # Small shapes consistent with the module: dim=4 channels, 16x16 spatial.
    N, C, H, W = 2, 4, 16, 16
    key = jax.random.PRNGKey(0)
    kx, kw1, kb1, kw2, kb2 = jax.random.split(key, 5)

    x = jax.random.normal(kx, (N, C, H, W), dtype=jnp.float32)
    fan_in = C * 3 * 3
    scale = 1.0 / np.sqrt(fan_in)
    w1 = jax.random.normal(kw1, (3, 3, C, C), dtype=jnp.float32) * scale
    b1 = jax.random.normal(kb1, (C,), dtype=jnp.float32) * scale
    w2 = jax.random.normal(kw2, (3, 3, C, C), dtype=jnp.float32) * scale
    b2 = jax.random.normal(kb2, (C,), dtype=jnp.float32) * scale

    ref = jax.block_until_ready(_reference(x, w1, b1, w2, b2))

    # tile_h=4 exercises first / interior / last row-bands (seam correctness);
    # tile_h=16 is the single-band case (both borders in one tile).
    for th in (4, 16):
        out = jax.block_until_ready(
            resnet_block_pallas(x, w1, b1, w2, b2, tile_h=th))
        assert out.shape == (N, C, H, W) and out.dtype == jnp.float32
        np.testing.assert_allclose(np.asarray(out), np.asarray(ref),
                                   rtol=1e-5, atol=1e-5)

    print("KERNEL_OK")
</pallas_src>

<mosaic_0001>
module attributes {stable_mosaic.version = 11 : i64} {
  func.func @resnet_block_kernel(%arg0: i32, %arg1: i32, %arg2: memref<1x4x16x4xf32, #tpu.memory_space<vmem>>, %arg3: memref<1x2x16x4xf32, #tpu.memory_space<vmem>>, %arg4: memref<1x2x16x4xf32, #tpu.memory_space<vmem>>, %arg5: memref<3x3x4x4xf32, #tpu.memory_space<vmem>>, %arg6: memref<1x1x4xf32, #tpu.memory_space<vmem>>, %arg7: memref<3x3x4x4xf32, #tpu.memory_space<vmem>>, %arg8: memref<1x1x4xf32, #tpu.memory_space<vmem>>, %arg9: memref<1x4x16x4xf32, #tpu.memory_space<vmem>>, %arg10: memref<6x16x4xf32, #tpu.memory_space<vmem>>) attributes {dimension_semantics = [#tpu.dimension_semantics<parallel>, #tpu.dimension_semantics<parallel>], iteration_bounds = array<i64: 2, 4>, scalar_prefetch = 0 : i64, scratch_operands = 1 : i64, tpu.core_type = #tpu.core_type<tc>, window_params = [{transform_indices = @transform_0, window_bounds = array<i64: 1, 4, 16, 4>}, {transform_indices = @transform_1, window_bounds = array<i64: 1, 2, 16, 4>}, {transform_indices = @transform_2, window_bounds = array<i64: 1, 2, 16, 4>}, {pipeline_mode = #tpu.pipeline_mode<synchronous>, transform_indices = @transform_3, window_bounds = array<i64: 3, 3, 4, 4>}, {pipeline_mode = #tpu.pipeline_mode<synchronous>, transform_indices = @transform_4, window_bounds = array<i64: 1, 1, 4>}, {pipeline_mode = #tpu.pipeline_mode<synchronous>, transform_indices = @transform_5, window_bounds = array<i64: 3, 3, 4, 4>}, {pipeline_mode = #tpu.pipeline_mode<synchronous>, transform_indices = @transform_6, window_bounds = array<i64: 1, 1, 4>}, {transform_indices = @transform_7, window_bounds = array<i64: 1, 4, 16, 4>}]} {
    %c0 = arith.constant 0 : index
    %c0_0 = arith.constant 0 : index
    %c0_1 = arith.constant 0 : index
    %c0_2 = arith.constant 0 : index
    %0 = vector.load %arg2[%c0, %c0_0, %c0_1, %c0_2] : memref<1x4x16x4xf32, #tpu.memory_space<vmem>>, vector<1x4x16x4xf32>
    %1 = vector.shape_cast %0 : vector<1x4x16x4xf32> to vector<4x16x4xf32>
    %c0_3 = arith.constant 0 : index
    %c0_4 = arith.constant 0 : index
    %c0_5 = arith.constant 0 : index
    %c0_6 = arith.constant 0 : index
    %2 = vector.load %arg3[%c0_3, %c0_4, %c0_5, %c0_6] : memref<1x2x16x4xf32, #tpu.memory_space<vmem>>, vector<1x2x16x4xf32>
    %3 = vector.shape_cast %2 : vector<1x2x16x4xf32> to vector<2x16x4xf32>
    %c0_7 = arith.constant 0 : index
    %c0_8 = arith.constant 0 : index
    %c0_9 = arith.constant 0 : index
    %c0_10 = arith.constant 0 : index
    %4 = vector.load %arg4[%c0_7, %c0_8, %c0_9, %c0_10] : memref<1x2x16x4xf32, #tpu.memory_space<vmem>>, vector<1x2x16x4xf32>
    %5 = vector.shape_cast %4 : vector<1x2x16x4xf32> to vector<2x16x4xf32>
    %c0_11 = arith.constant 0 : index
    %c0_12 = arith.constant 0 : index
    %c0_13 = arith.constant 0 : index
    %c0_14 = arith.constant 0 : index
    %6 = vector.load %arg5[%c0_11, %c0_12, %c0_13, %c0_14] : memref<3x3x4x4xf32, #tpu.memory_space<vmem>>, vector<3x3x4x4xf32>
    %c0_15 = arith.constant 0 : index
    %c0_16 = arith.constant 0 : index
    %c0_17 = arith.constant 0 : index
    %7 = vector.load %arg6[%c0_15, %c0_16, %c0_17] : memref<1x1x4xf32, #tpu.memory_space<vmem>>, vector<1x1x4xf32>
    %c0_18 = arith.constant 0 : index
    %c0_19 = arith.constant 0 : index
    %c0_20 = arith.constant 0 : index
    %c0_21 = arith.constant 0 : index
    %8 = vector.load %arg7[%c0_18, %c0_19, %c0_20, %c0_21] : memref<3x3x4x4xf32, #tpu.memory_space<vmem>>, vector<3x3x4x4xf32>
    %c0_22 = arith.constant 0 : index
    %c0_23 = arith.constant 0 : index
    %c0_24 = arith.constant 0 : index
    %9 = vector.load %arg8[%c0_22, %c0_23, %c0_24] : memref<1x1x4xf32, #tpu.memory_space<vmem>>, vector<1x1x4xf32>
    %10 = tpu.concatenate %3, %1, %5 in 0 : vector<2x16x4xf32>, vector<4x16x4xf32>, vector<2x16x4xf32> -> vector<8x16x4xf32>
    %11 = vector.extract_strided_slice %10 {offsets = [0, 1, 0], sizes = [8, 1, 4], strides = [1, 1, 1]} : vector<8x16x4xf32> to vector<8x1x4xf32>
    %12 = vector.extract_strided_slice %10 {offsets = [0, 0, 0], sizes = [8, 15, 4], strides = [1, 1, 1]} : vector<8x16x4xf32> to vector<8x15x4xf32>
    %13 = tpu.concatenate %11, %12 in 1 : vector<8x1x4xf32>, vector<8x15x4xf32> -> vector<8x16x4xf32>
    %14 = vector.extract_strided_slice %10 {offsets = [0, 1, 0], sizes = [8, 15, 4], strides = [1, 1, 1]} : vector<8x16x4xf32> to vector<8x15x4xf32>
    %15 = vector.extract_strided_slice %10 {offsets = [0, 14, 0], sizes = [8, 1, 4], strides = [1, 1, 1]} : vector<8x16x4xf32> to vector<8x1x4xf32>
    %16 = tpu.concatenate %14, %15 in 1 : vector<8x15x4xf32>, vector<8x1x4xf32> -> vector<8x16x4xf32>
    %17 = vector.extract_strided_slice %13 {offsets = [0, 0, 0], sizes = [6, 16, 4], strides = [1, 1, 1]} : vector<8x16x4xf32> to vector<6x16x4xf32>
    %18 = vector.extract_strided_slice %6 {offsets = [0, 0, 0, 0], sizes = [1, 1, 4, 4], strides = [1, 1, 1, 1]} : vector<3x3x4x4xf32> to vector<1x1x4x4xf32>
    %19 = vector.shape_cast %18 : vector<1x1x4x4xf32> to vector<4x4xf32>
    %cst = arith.constant dense<0.000000e+00> : vector<6x16x4xf32>
    %20 = tpu.matmul %17, %19, %cst {dimension_numbers = #tpu.dot_dimension_numbers<[2], [0], [0, 1], [1], [0, 0, 0, 1, 1, 1], [], []>} : vector<6x16x4xf32>, vector<4x4xf32>, vector<6x16x4xf32> -> vector<6x16x4xf32>
    %21 = vector.extract_strided_slice %10 {offsets = [0, 0, 0], sizes = [6, 16, 4], strides = [1, 1, 1]} : vector<8x16x4xf32> to vector<6x16x4xf32>
    %22 = vector.extract_strided_slice %6 {offsets = [0, 1, 0, 0], sizes = [1, 1, 4, 4], strides = [1, 1, 1, 1]} : vector<3x3x4x4xf32> to vector<1x1x4x4xf32>
    %23 = vector.shape_cast %22 : vector<1x1x4x4xf32> to vector<4x4xf32>
    %cst_25 = arith.constant dense<0.000000e+00> : vector<6x16x4xf32>
    %24 = tpu.matmul %21, %23, %cst_25 {dimension_numbers = #tpu.dot_dimension_numbers<[2], [0], [0, 1], [1], [0, 0, 0, 1, 1, 1], [], []>} : vector<6x16x4xf32>, vector<4x4xf32>, vector<6x16x4xf32> -> vector<6x16x4xf32>
    %25 = arith.addf %20, %24 : vector<6x16x4xf32>
    %26 = vector.extract_strided_slice %16 {offsets = [0, 0, 0], sizes = [6, 16, 4], strides = [1, 1, 1]} : vector<8x16x4xf32> to vector<6x16x4xf32>
    %27 = vector.extract_strided_slice %6 {offsets = [0, 2, 0, 0], sizes = [1, 1, 4, 4], strides = [1, 1, 1, 1]} : vector<3x3x4x4xf32> to vector<1x1x4x4xf32>
    %28 = vector.shape_cast %27 : vector<1x1x4x4xf32> to vector<4x4xf32>
    %cst_26 = arith.constant dense<0.000000e+00> : vector<6x16x4xf32>
    %29 = tpu.matmul %26, %28, %cst_26 {dimension_numbers = #tpu.dot_dimension_numbers<[2], [0], [0, 1], [1], [0, 0, 0, 1, 1, 1], [], []>} : vector<6x16x4xf32>, vector<4x4xf32>, vector<6x16x4xf32> -> vector<6x16x4xf32>
    %30 = arith.addf %25, %29 : vector<6x16x4xf32>
    %31 = vector.extract_strided_slice %13 {offsets = [1, 0, 0], sizes = [6, 16, 4], strides = [1, 1, 1]} : vector<8x16x4xf32> to vector<6x16x4xf32>
    %32 = vector.extract_strided_slice %6 {offsets = [1, 0, 0, 0], sizes = [1, 1, 4, 4], strides = [1, 1, 1, 1]} : vector<3x3x4x4xf32> to vector<1x1x4x4xf32>
    %33 = vector.shape_cast %32 : vector<1x1x4x4xf32> to vector<4x4xf32>
    %cst_27 = arith.constant dense<0.000000e+00> : vector<6x16x4xf32>
    %34 = tpu.matmul %31, %33, %cst_27 {dimension_numbers = #tpu.dot_dimension_numbers<[2], [0], [0, 1], [1], [0, 0, 0, 1, 1, 1], [], []>} : vector<6x16x4xf32>, vector<4x4xf32>, vector<6x16x4xf32> -> vector<6x16x4xf32>
    %35 = arith.addf %30, %34 : vector<6x16x4xf32>
    %36 = vector.extract_strided_slice %10 {offsets = [1, 0, 0], sizes = [6, 16, 4], strides = [1, 1, 1]} : vector<8x16x4xf32> to vector<6x16x4xf32>
    %37 = vector.extract_strided_slice %6 {offsets = [1, 1, 0, 0], sizes = [1, 1, 4, 4], strides = [1, 1, 1, 1]} : vector<3x3x4x4xf32> to vector<1x1x4x4xf32>
    %38 = vector.shape_cast %37 : vector<1x1x4x4xf32> to vector<4x4xf32>
    %cst_28 = arith.constant dense<0.000000e+00> : vector<6x16x4xf32>
    %39 = tpu.matmul %36, %38, %cst_28 {dimension_numbers = #tpu.dot_dimension_numbers<[2], [0], [0, 1], [1], [0, 0, 0, 1, 1, 1], [], []>} : vector<6x16x4xf32>, vector<4x4xf32>, vector<6x16x4xf32> -> vector<6x16x4xf32>
    %40 = arith.addf %35, %39 : vector<6x16x4xf32>
    %41 = vector.extract_strided_slice %16 {offsets = [1, 0, 0], sizes = [6, 16, 4], strides = [1, 1, 1]} : vector<8x16x4xf32> to vector<6x16x4xf32>
    %42 = vector.extract_strided_slice %6 {offsets = [1, 2, 0, 0], sizes = [1, 1, 4, 4], strides = [1, 1, 1, 1]} : vector<3x3x4x4xf32> to vector<1x1x4x4xf32>
    %43 = vector.shape_cast %42 : vector<1x1x4x4xf32> to vector<4x4xf32>
    %cst_29 = arith.constant dense<0.000000e+00> : vector<6x16x4xf32>
    %44 = tpu.matmul %41, %43, %cst_29 {dimension_numbers = #tpu.dot_dimension_numbers<[2], [0], [0, 1], [1], [0, 0, 0, 1, 1, 1], [], []>} : vector<6x16x4xf32>, vector<4x4xf32>, vector<6x16x4xf32> -> vector<6x16x4xf32>
    %45 = arith.addf %40, %44 : vector<6x16x4xf32>
    %46 = vector.extract_strided_slice %13 {offsets = [2, 0, 0], sizes = [6, 16, 4], strides = [1, 1, 1]} : vector<8x16x4xf32> to vector<6x16x4xf32>
    %47 = vector.extract_strided_slice %6 {offsets = [2, 0, 0, 0], sizes = [1, 1, 4, 4], strides = [1, 1, 1, 1]} : vector<3x3x4x4xf32> to vector<1x1x4x4xf32>
    %48 = vector.shape_cast %47 : vector<1x1x4x4xf32> to vector<4x4xf32>
    %cst_30 = arith.constant dense<0.000000e+00> : vector<6x16x4xf32>
    %49 = tpu.matmul %46, %48, %cst_30 {dimension_numbers = #tpu.dot_dimension_numbers<[2], [0], [0, 1], [1], [0, 0, 0, 1, 1, 1], [], []>} : vector<6x16x4xf32>, vector<4x4xf32>, vector<6x16x4xf32> -> vector<6x16x4xf32>
    %50 = arith.addf %45, %49 : vector<6x16x4xf32>
    %51 = vector.extract_strided_slice %10 {offsets = [2, 0, 0], sizes = [6, 16, 4], strides = [1, 1, 1]} : vector<8x16x4xf32> to vector<6x16x4xf32>
    %52 = vector.extract_strided_slice %6 {offsets = [2, 1, 0, 0], sizes = [1, 1, 4, 4], strides = [1, 1, 1, 1]} : vector<3x3x4x4xf32> to vector<1x1x4x4xf32>
    %53 = vector.shape_cast %52 : vector<1x1x4x4xf32> to vector<4x4xf32>
    %cst_31 = arith.constant dense<0.000000e+00> : vector<6x16x4xf32>
    %54 = tpu.matmul %51, %53, %cst_31 {dimension_numbers = #tpu.dot_dimension_numbers<[2], [0], [0, 1], [1], [0, 0, 0, 1, 1, 1], [], []>} : vector<6x16x4xf32>, vector<4x4xf32>, vector<6x16x4xf32> -> vector<6x16x4xf32>
    %55 = arith.addf %50, %54 : vector<6x16x4xf32>
    %56 = vector.extract_strided_slice %16 {offsets = [2, 0, 0], sizes = [6, 16, 4], strides = [1, 1, 1]} : vector<8x16x4xf32> to vector<6x16x4xf32>
    %57 = vector.extract_strided_slice %6 {offsets = [2, 2, 0, 0], sizes = [1, 1, 4, 4], strides = [1, 1, 1, 1]} : vector<3x3x4x4xf32> to vector<1x1x4x4xf32>
    %58 = vector.shape_cast %57 : vector<1x1x4x4xf32> to vector<4x4xf32>
    %cst_32 = arith.constant dense<0.000000e+00> : vector<6x16x4xf32>
    %59 = tpu.matmul %56, %58, %cst_32 {dimension_numbers = #tpu.dot_dimension_numbers<[2], [0], [0, 1], [1], [0, 0, 0, 1, 1, 1], [], []>} : vector<6x16x4xf32>, vector<4x4xf32>, vector<6x16x4xf32> -> vector<6x16x4xf32>
    %60 = arith.addf %55, %59 : vector<6x16x4xf32>
    %61 = vector.broadcast %7 : vector<1x1x4xf32> to vector<6x16x4xf32>
    %62 = arith.addf %60, %61 : vector<6x16x4xf32>
    %cst_33 = arith.constant 0.000000e+00 : f32
    %63 = vector.broadcast %cst_33 : f32 to vector<6x16x4xf32>
    %64 = arith.maximumf %62, %63 : vector<6x16x4xf32>
    %c0_34 = arith.constant 0 : index
    %c0_35 = arith.constant 0 : index
    %c0_36 = arith.constant 0 : index
    %65 = vector.load %arg10[%c0_34, %c0_35, %c0_36] : memref<6x16x4xf32, #tpu.memory_space<vmem>>, vector<6x16x4xf32>
    tpu.vector_store %arg10[%c0_34, %c0_35, %c0_36], %64 {strides = array<i32>} : memref<6x16x4xf32, #tpu.memory_space<vmem>>, vector<6x16x4xf32>,
    %c0_i32 = arith.constant 0 : i32
    %66 = arith.cmpi eq, %arg1, %c0_i32 : i32
    %67 = arith.extui %66 : i1 to i32
    %c0_i32_37 = arith.constant 0 : i32
    %68 = arith.cmpi ne, %67, %c0_i32_37 : i32
    scf.if %68 {
      %c2 = arith.constant 2 : index
      %c0_55 = arith.constant 0 : index
      %c0_56 = arith.constant 0 : index
      %129 = vector.load %arg10[%c2, %c0_55, %c0_56] : memref<6x16x4xf32, #tpu.memory_space<vmem>>, vector<1x16x4xf32>
      %130 = vector.shape_cast %129 : vector<1x16x4xf32> to vector<16x4xf32>
      %c0_57 = arith.constant 0 : index
      %c0_58 = arith.constant 0 : index
      %c0_59 = arith.constant 0 : index
      %131 = vector.load %arg10[%c0_57, %c0_58, %c0_59] : memref<6x16x4xf32, #tpu.memory_space<vmem>>, vector<1x16x4xf32>
      %132 = vector.shape_cast %131 : vector<1x16x4xf32> to vector<16x4xf32>
      %133 = vector.shape_cast %130 : vector<16x4xf32> to vector<1x16x4xf32>
      tpu.vector_store %arg10[%c0_57, %c0_58, %c0_59], %133 {strides = array<i32>} : memref<6x16x4xf32, #tpu.memory_space<vmem>>, vector<1x16x4xf32>,
    } else {
    }
    %c3_i32 = arith.constant 3 : i32
    %69 = arith.cmpi eq, %arg1, %c3_i32 : i32
    %70 = arith.extui %69 : i1 to i32
    %c0_i32_38 = arith.constant 0 : i32
    %71 = arith.cmpi ne, %70, %c0_i32_38 : i32
    scf.if %71 {
      %c3 = arith.constant 3 : index
      %c0_55 = arith.constant 0 : index
      %c0_56 = arith.constant 0 : index
      %129 = vector.load %arg10[%c3, %c0_55, %c0_56] : memref<6x16x4xf32, #tpu.memory_space<vmem>>, vector<1x16x4xf32>
      %130 = vector.shape_cast %129 : vector<1x16x4xf32> to vector<16x4xf32>
      %c5 = arith.constant 5 : index
      %c0_57 = arith.constant 0 : index
      %c0_58 = arith.constant 0 : index
      %131 = vector.load %arg10[%c5, %c0_57, %c0_58] : memref<6x16x4xf32, #tpu.memory_space<vmem>>, vector<1x16x4xf32>
      %132 = vector.shape_cast %131 : vector<1x16x4xf32> to vector<16x4xf32>
      %133 = vector.shape_cast %130 : vector<16x4xf32> to vector<1x16x4xf32>
      tpu.vector_store %arg10[%c5, %c0_57, %c0_58], %133 {strides = array<i32>} : memref<6x16x4xf32, #tpu.memory_space<vmem>>, vector<1x16x4xf32>,
    } else {
    }
    %c0_39 = arith.constant 0 : index
    %c0_40 = arith.constant 0 : index
    %c0_41 = arith.constant 0 : index
    %72 = vector.load %arg10[%c0_39, %c0_40, %c0_41] : memref<6x16x4xf32, #tpu.memory_space<vmem>>, vector<6x16x4xf32>
    %73 = vector.extract_strided_slice %72 {offsets = [0, 1, 0], sizes = [6, 1, 4], strides = [1, 1, 1]} : vector<6x16x4xf32> to vector<6x1x4xf32>
    %74 = vector.extract_strided_slice %72 {offsets = [0, 0, 0], sizes = [6, 15, 4], strides = [1, 1, 1]} : vector<6x16x4xf32> to vector<6x15x4xf32>
    %75 = tpu.concatenate %73, %74 in 1 : vector<6x1x4xf32>, vector<6x15x4xf32> -> vector<6x16x4xf32>
    %76 = vector.extract_strided_slice %72 {offsets = [0, 1, 0], sizes = [6, 15, 4], strides = [1, 1, 1]} : vector<6x16x4xf32> to vector<6x15x4xf32>
    %77 = vector.extract_strided_slice %72 {offsets = [0, 14, 0], sizes = [6, 1, 4], strides = [1, 1, 1]} : vector<6x16x4xf32> to vector<6x1x4xf32>
    %78 = tpu.concatenate %76, %77 in 1 : vector<6x15x4xf32>, vector<6x1x4xf32> -> vector<6x16x4xf32>
    %79 = vector.extract_strided_slice %75 {offsets = [0, 0, 0], sizes = [4, 16, 4], strides = [1, 1, 1]} : vector<6x16x4xf32> to vector<4x16x4xf32>
    %80 = vector.extract_strided_slice %8 {offsets = [0, 0, 0, 0], sizes = [1, 1, 4, 4], strides = [1, 1, 1, 1]} : vector<3x3x4x4xf32> to vector<1x1x4x4xf32>
    %81 = vector.shape_cast %80 : vector<1x1x4x4xf32> to vector<4x4xf32>
    %cst_42 = arith.constant dense<0.000000e+00> : vector<4x16x4xf32>
    %82 = tpu.matmul %79, %81, %cst_42 {dimension_numbers = #tpu.dot_dimension_numbers<[2], [0], [0, 1], [1], [0, 0, 0, 1, 1, 1], [], []>} : vector<4x16x4xf32>, vector<4x4xf32>, vector<4x16x4xf32> -> vector<4x16x4xf32>
    %83 = vector.extract_strided_slice %72 {offsets = [0, 0, 0], sizes = [4, 16, 4], strides = [1, 1, 1]} : vector<6x16x4xf32> to vector<4x16x4xf32>
    %84 = vector.extract_strided_slice %8 {offsets = [0, 1, 0, 0], sizes = [1, 1, 4, 4], strides = [1, 1, 1, 1]} : vector<3x3x4x4xf32> to vector<1x1x4x4xf32>
    %85 = vector.shape_cast %84 : vector<1x1x4x4xf32> to vector<4x4xf32>
    %cst_43 = arith.constant dense<0.000000e+00> : vector<4x16x4xf32>
    %86 = tpu.matmul %83, %85, %cst_43 {dimension_numbers = #tpu.dot_dimension_numbers<[2], [0], [0, 1], [1], [0, 0, 0, 1, 1, 1], [], []>} : vector<4x16x4xf32>, vector<4x4xf32>, vector<4x16x4xf32> -> vector<4x16x4xf32>
    %87 = arith.addf %82, %86 : vector<4x16x4xf32>
    %88 = vector.extract_strided_slice %78 {offsets = [0, 0, 0], sizes = [4, 16, 4], strides = [1, 1, 1]} : vector<6x16x4xf32> to vector<4x16x4xf32>
    %89 = vector.extract_strided_slice %8 {offsets = [0, 2, 0, 0], sizes = [1, 1, 4, 4], strides = [1, 1, 1, 1]} : vector<3x3x4x4xf32> to vector<1x1x4x4xf32>
    %90 = vector.shape_cast %89 : vector<1x1x4x4xf32> to vector<4x4xf32>
    %cst_44 = arith.constant dense<0.000000e+00> : vector<4x16x4xf32>
    %91 = tpu.matmul %88, %90, %cst_44 {dimension_numbers = #tpu.dot_dimension_numbers<[2], [0], [0, 1], [1], [0, 0, 0, 1, 1, 1], [], []>} : vector<4x16x4xf32>, vector<4x4xf32>, vector<4x16x4xf32> -> vector<4x16x4xf32>
    %92 = arith.addf %87, %91 : vector<4x16x4xf32>
    %93 = vector.extract_strided_slice %75 {offsets = [1, 0, 0], sizes = [4, 16, 4], strides = [1, 1, 1]} : vector<6x16x4xf32> to vector<4x16x4xf32>
    %94 = vector.extract_strided_slice %8 {offsets = [1, 0, 0, 0], sizes = [1, 1, 4, 4], strides = [1, 1, 1, 1]} : vector<3x3x4x4xf32> to vector<1x1x4x4xf32>
    %95 = vector.shape_cast %94 : vector<1x1x4x4xf32> to vector<4x4xf32>
    %cst_45 = arith.constant dense<0.000000e+00> : vector<4x16x4xf32>
    %96 = tpu.matmul %93, %95, %cst_45 {dimension_numbers = #tpu.dot_dimension_numbers<[2], [0], [0, 1], [1], [0, 0, 0, 1, 1, 1], [], []>} : vector<4x16x4xf32>, vector<4x4xf32>, vector<4x16x4xf32> -> vector<4x16x4xf32>
    %97 = arith.addf %92, %96 : vector<4x16x4xf32>
    %98 = vector.extract_strided_slice %72 {offsets = [1, 0, 0], sizes = [4, 16, 4], strides = [1, 1, 1]} : vector<6x16x4xf32> to vector<4x16x4xf32>
    %99 = vector.extract_strided_slice %8 {offsets = [1, 1, 0, 0], sizes = [1, 1, 4, 4], strides = [1, 1, 1, 1]} : vector<3x3x4x4xf32> to vector<1x1x4x4xf32>
    %100 = vector.shape_cast %99 : vector<1x1x4x4xf32> to vector<4x4xf32>
    %cst_46 = arith.constant dense<0.000000e+00> : vector<4x16x4xf32>
    %101 = tpu.matmul %98, %100, %cst_46 {dimension_numbers = #tpu.dot_dimension_numbers<[2], [0], [0, 1], [1], [0, 0, 0, 1, 1, 1], [], []>} : vector<4x16x4xf32>, vector<4x4xf32>, vector<4x16x4xf32> -> vector<4x16x4xf32>
    %102 = arith.addf %97, %101 : vector<4x16x4xf32>
    %103 = vector.extract_strided_slice %78 {offsets = [1, 0, 0], sizes = [4, 16, 4], strides = [1, 1, 1]} : vector<6x16x4xf32> to vector<4x16x4xf32>
    %104 = vector.extract_strided_slice %8 {offsets = [1, 2, 0, 0], sizes = [1, 1, 4, 4], strides = [1, 1, 1, 1]} : vector<3x3x4x4xf32> to vector<1x1x4x4xf32>
    %105 = vector.shape_cast %104 : vector<1x1x4x4xf32> to vector<4x4xf32>
    %cst_47 = arith.constant dense<0.000000e+00> : vector<4x16x4xf32>
    %106 = tpu.matmul %103, %105, %cst_47 {dimension_numbers = #tpu.dot_dimension_numbers<[2], [0], [0, 1], [1], [0, 0, 0, 1, 1, 1], [], []>} : vector<4x16x4xf32>, vector<4x4xf32>, vector<4x16x4xf32> -> vector<4x16x4xf32>
    %107 = arith.addf %102, %106 : vector<4x16x4xf32>
    %108 = vector.extract_strided_slice %75 {offsets = [2, 0, 0], sizes = [4, 16, 4], strides = [1, 1, 1]} : vector<6x16x4xf32> to vector<4x16x4xf32>
    %109 = vector.extract_strided_slice %8 {offsets = [2, 0, 0, 0], sizes = [1, 1, 4, 4], strides = [1, 1, 1, 1]} : vector<3x3x4x4xf32> to vector<1x1x4x4xf32>
    %110 = vector.shape_cast %109 : vector<1x1x4x4xf32> to vector<4x4xf32>
    %cst_48 = arith.constant dense<0.000000e+00> : vector<4x16x4xf32>
    %111 = tpu.matmul %108, %110, %cst_48 {dimension_numbers = #tpu.dot_dimension_numbers<[2], [0], [0, 1], [1], [0, 0, 0, 1, 1, 1], [], []>} : vector<4x16x4xf32>, vector<4x4xf32>, vector<4x16x4xf32> -> vector<4x16x4xf32>
    %112 = arith.addf %107, %111 : vector<4x16x4xf32>
    %113 = vector.extract_strided_slice %72 {offsets = [2, 0, 0], sizes = [4, 16, 4], strides = [1, 1, 1]} : vector<6x16x4xf32> to vector<4x16x4xf32>
    %114 = vector.extract_strided_slice %8 {offsets = [2, 1, 0, 0], sizes = [1, 1, 4, 4], strides = [1, 1, 1, 1]} : vector<3x3x4x4xf32> to vector<1x1x4x4xf32>
    %115 = vector.shape_cast %114 : vector<1x1x4x4xf32> to vector<4x4xf32>
    %cst_49 = arith.constant dense<0.000000e+00> : vector<4x16x4xf32>
    %116 = tpu.matmul %113, %115, %cst_49 {dimension_numbers = #tpu.dot_dimension_numbers<[2], [0], [0, 1], [1], [0, 0, 0, 1, 1, 1], [], []>} : vector<4x16x4xf32>, vector<4x4xf32>, vector<4x16x4xf32> -> vector<4x16x4xf32>
    %117 = arith.addf %112, %116 : vector<4x16x4xf32>
    %118 = vector.extract_strided_slice %78 {offsets = [2, 0, 0], sizes = [4, 16, 4], strides = [1, 1, 1]} : vector<6x16x4xf32> to vector<4x16x4xf32>
    %119 = vector.extract_strided_slice %8 {offsets = [2, 2, 0, 0], sizes = [1, 1, 4, 4], strides = [1, 1, 1, 1]} : vector<3x3x4x4xf32> to vector<1x1x4x4xf32>
    %120 = vector.shape_cast %119 : vector<1x1x4x4xf32> to vector<4x4xf32>
    %cst_50 = arith.constant dense<0.000000e+00> : vector<4x16x4xf32>
    %121 = tpu.matmul %118, %120, %cst_50 {dimension_numbers = #tpu.dot_dimension_numbers<[2], [0], [0, 1], [1], [0, 0, 0, 1, 1, 1], [], []>} : vector<4x16x4xf32>, vector<4x4xf32>, vector<4x16x4xf32> -> vector<4x16x4xf32>
    %122 = arith.addf %117, %121 : vector<4x16x4xf32>
    %123 = vector.broadcast %9 : vector<1x1x4xf32> to vector<4x16x4xf32>
    %124 = arith.addf %122, %123 : vector<4x16x4xf32>
    %125 = arith.addf %1, %124 : vector<4x16x4xf32>
    %c0_51 = arith.constant 0 : index
    %c0_52 = arith.constant 0 : index
    %c0_53 = arith.constant 0 : index
    %c0_54 = arith.constant 0 : index
    %126 = vector.load %arg9[%c0_51, %c0_52, %c0_53, %c0_54] : memref<1x4x16x4xf32, #tpu.memory_space<vmem>>, vector<1x4x16x4xf32>
    %127 = vector.shape_cast %126 : vector<1x4x16x4xf32> to vector<4x16x4xf32>
    %128 = vector.shape_cast %125 : vector<4x16x4xf32> to vector<1x4x16x4xf32>
    tpu.vector_store %arg9[%c0_51, %c0_52, %c0_53, %c0_54], %128 {strides = array<i32>} : memref<1x4x16x4xf32, #tpu.memory_space<vmem>>, vector<1x4x16x4xf32>,
    return
  }
  func.func @transform_0(%arg0: i32, %arg1: i32) -> (i32, i32, i32, i32) {
    %c0_i32 = arith.constant 0 : i32
    %c0_i32_0 = arith.constant 0 : i32
    %c0_i32_1 = arith.constant 0 : i32
    return %arg0, %arg1, %c0_i32, %c0_i32_0 : i32, i32, i32, i32
  }
  func.func @transform_1(%arg0: i32, %arg1: i32) -> (i32, i32, i32, i32) {
    %c2_i32 = arith.constant 2 : i32
    %0 = arith.muli %arg1, %c2_i32 : i32
    %c1_i32 = arith.constant 1 : i32
    %1 = arith.subi %0, %c1_i32 : i32
    %c0_i32 = arith.constant 0 : i32
    %2 = arith.maxsi %1, %c0_i32 : i32
    %c0_i32_0 = arith.constant 0 : i32
    %c0_i32_1 = arith.constant 0 : i32
    %c0_i32_2 = arith.constant 0 : i32
    return %arg0, %2, %c0_i32_0, %c0_i32_1 : i32, i32, i32, i32
  }
  func.func @transform_2(%arg0: i32, %arg1: i32) -> (i32, i32, i32, i32) {
    %c1_i32 = arith.constant 1 : i32
    %0 = arith.addi %arg1, %c1_i32 : i32
    %c2_i32 = arith.constant 2 : i32
    %1 = arith.muli %0, %c2_i32 : i32
    %c7_i32 = arith.constant 7 : i32
    %2 = arith.minsi %1, %c7_i32 : i32
    %c0_i32 = arith.constant 0 : i32
    %c0_i32_0 = arith.constant 0 : i32
    %c0_i32_1 = arith.constant 0 : i32
    return %arg0, %2, %c0_i32, %c0_i32_0 : i32, i32, i32, i32
  }
  func.func @transform_3(%arg0: i32, %arg1: i32) -> (i32, i32, i32, i32) {
    %c0_i32 = arith.constant 0 : i32
    %c0_i32_0 = arith.constant 0 : i32
    %c0_i32_1 = arith.constant 0 : i32
    %c0_i32_2 = arith.constant 0 : i32
    %c0_i32_3 = arith.constant 0 : i32
    return %c0_i32, %c0_i32_0, %c0_i32_1, %c0_i32_2 : i32, i32, i32, i32
  }
  func.func @transform_4(%arg0: i32, %arg1: i32) -> (i32, i32, i32) {
    %c0_i32 = arith.constant 0 : i32
    %c0_i32_0 = arith.constant 0 : i32
    %c0_i32_1 = arith.constant 0 : i32
    %c0_i32_2 = arith.constant 0 : i32
    return %c0_i32, %c0_i32_0, %c0_i32_1 : i32, i32, i32
  }
  func.func @transform_5(%arg0: i32, %arg1: i32) -> (i32, i32, i32, i32) {
    %c0_i32 = arith.constant 0 : i32
    %c0_i32_0 = arith.constant 0 : i32
    %c0_i32_1 = arith.constant 0 : i32
    %c0_i32_2 = arith.constant 0 : i32
    %c0_i32_3 = arith.constant 0 : i32
    return %c0_i32, %c0_i32_0, %c0_i32_1, %c0_i32_2 : i32, i32, i32, i32
  }
  func.func @transform_6(%arg0: i32, %arg1: i32) -> (i32, i32, i32) {
    %c0_i32 = arith.constant 0 : i32
    %c0_i32_0 = arith.constant 0 : i32
    %c0_i32_1 = arith.constant 0 : i32
    %c0_i32_2 = arith.constant 0 : i32
    return %c0_i32, %c0_i32_0, %c0_i32_1 : i32, i32, i32
  }
  func.func @transform_7(%arg0: i32, %arg1: i32) -> (i32, i32, i32, i32) {
    %c0_i32 = arith.constant 0 : i32
    %c0_i32_0 = arith.constant 0 : i32
    %c0_i32_1 = arith.constant 0 : i32
    return %arg0, %arg1, %c0_i32, %c0_i32_0 : i32, i32, i32, i32
  }
}

</mosaic_0001>

<bundles_post_ra>
// kernel: tpu_custom_call.1
= control target key start
LH: loop header
LB: loop body
LE: loop exit
PB: predicated region body
PF: predicated region fallthrough
CT: control target
= control target key end

     0   :  { %s4423_s24 = smov 0   ;;  %s4425_s25 = smov 0   ;;  %s5220_s0 = inlined_call_operand.vmem [shape: f32[2,16,16,4], index: 0, kind: input, shape index: {}]   ;;  %s5221_s1 = inlined_call_operand.vmem [shape: f32[2,16,16,4], index: 1, kind: input, shape index: {}]   ;;  %s5222_s2 = inlined_call_operand.vmem [shape: f32[2,16,16,4], index: 2, kind: input, shape index: {}]   ;;  %s5223_s3 = inlined_call_operand.vmem [shape: f32[3,3,4,4], index: 3, kind: input, shape index: {}]   ;;  %s5224_s4 = inlined_call_operand.vmem [shape: f32[1,1,4], index: 4, kind: input, shape index: {}]   ;;  %s5225_s5 = inlined_call_operand.vmem [shape: f32[3,3,4,4], index: 5, kind: input, shape index: {}]   ;;  %s5226_s6 = inlined_call_operand.vmem [shape: f32[1,1,4], index: 6, kind: input, shape index: {}]   ;;  %s5227_s7 = inlined_call_operand.vmem [shape: f32[2,16,16,4], index: 7, kind: output, shape index: {}]  }
   0x1   :  { %s4427_s26 = smov 0   ;;  %s4429_s27 = smov 0  }
   0x2   :  { %s4431_s28 = smov 0  }
   0x3 LB: > { %s26_s29 = sadd.s32 1, %s4373_s26  ;;  %s29_s30 = sadd.s32 1, %s4377_s27  ;;  %s4381_s28 = sphi %s4431_s28, %s17_s28   ;;  %s4377_s27 = sphi %s4429_s27, %s5231_s27   ;;  %s4373_s26 = sphi %s4427_s26, %s5230_s26   ;;  %s4369_s25 = sphi %s4425_s25, %s5229_s25   ;;  %s4365_s24 = sphi %s4423_s24, %s5228_s24  }
   0x4   : > { %p27_p0 = scmp.ge.s32.totalorder %s26_s29, 4  ;;  %p3407_p1 = scmp.ge.s32.totalorder %s4381_s28, 1 }
   0x5   : > { %p327_p2 = scmp.lt.s32.totalorder %s4381_s28, 9 }
   0x6   : > { %s5233_s29 = smov (%p27_p0, %s26_s29), 0  ;;  %s5235_s30 = smov (!%p27_p0, %s29_s30), %s4377_s27 }
   0x7   : > { %p328_p3 = pnand %p3407_p1, %p327_p2  ;;  %p31_p4 = scmp.ge.s32.totalorder %s5235_s30, 2 }
   0x8   : > { %v4458_v0 = vld [vmem:[%s5223_s3] sm:$0xf] (!%p328_p3)  ;;  %vm632_vm0 = vcmask (!%p328_p3), 1043456   ;;  %s3408_s10 = sshll.u32 (!%p328_p3), %s4365_s24, 2  ;;  %p398_p5 = scmp.lt.s32.totalorder (!%p328_p3), %s4369_s25, 1  ;;  %vm525_vm1 = vcmask (!%p328_p3), 1040384  }
   0x9   : > { %s5237_s30 = smov (%p31_p4, %s5235_s30), 0  ;;  %331 = sbr.rel (%p328_p3) target bundleno = 798 (0x31e), region = 48 }
   0xa   : > { %3855 = vmatprep.subr.msk.mxu0 (!%p328_p3), %vm632_vm0, %v4458_v0  ;;  %p400_p6 = scmp.lt.s32.totalorder (!%p328_p3), %s3408_s10, 15  ;;  %s3412_s11 = sshll.u32 (!%p328_p3), %s4365_s24, 1  ;;  %v475_v1 = vld [vmem:[%s5223_s3 + $0x8] sm:$0xf] (!%p328_p3)  ;;  %vm607_vm2 = vcmask (!%p328_p3), 31744   ;;  %vm566_vm3 = vcmask (!%p328_p3), 1046528  }
   0xb   : > { %3856 = vmatpush3.msk.msra.mxu0 (!%p328_p3), %vm632_vm0, %v4458_v0  ;;  %s3413_s15 = sadd.s32 (!%p328_p3), 4294967295, %s3412_s11  ;;  %s3636_s18 = sadd.s32 (!%p328_p3), 2, %s3412_s11  ;;  %v476_v21 = vld [vmem:[%s5223_s3 + $0xc] sm:$0xf] (!%p328_p3)  ;;  %v474_v24 = vld [vmem:[%s5223_s3 + $0x4] sm:$0xf] (!%p328_p3) }
   0xc   : > { %3875 = vmatprep.subr.msk.mxu0 (!%p328_p3), %vm632_vm0, %v475_v1  ;;  %p410_p7 = scmp.gt.s32.totalorder (!%p328_p3), %s3413_s15, 0  ;;  %p429_p8 = scmp.lt.s32.totalorder (!%p328_p3), %s3636_s18, 7  ;;  %v4527_v25 = vld [vmem:[%s5225_s5] sm:$0xf] (!%p328_p3)  ;;  %v4543_v30 = vld [vmem:[%s5225_s5 + $0x4] sm:$0xf] (!%p328_p3)  ;;  %3835 = vmatprep.subr.msk.mxu1 (!%p328_p3), %vm632_vm0, %v474_v24 }
   0xd   : > { %v4552_v32 = vld [vmem:[%s5225_s5 + $0x8] sm:$0xf] (!%p328_p3)  ;;  %v4557_v33 = vld [vmem:[%s5225_s5 + $0xc] sm:$0xf] (!%p328_p3)  ;;  %v4562_v34 = vld [vmem:[%s5225_s5 + $0x10] sm:$0xf] (!%p328_p3)  ;;  %3836 = vmatpush3.msk.msra.mxu1 (!%p328_p3), %vm632_vm0, %v474_v24 }
   0xe   : > { %v4578_v37 = vld [vmem:[%s5225_s5 + $0x14] sm:$0xf] (!%p328_p3)  ;;  %v4583_v38 = vld [vmem:[%s5225_s5 + $0x18] sm:$0xf] (!%p328_p3)  ;;  %v4588_v39 = vld [vmem:[%s5225_s5 + $0x1c] sm:$0xf] (!%p328_p3)  ;;  %4141 = vmatprep.subr.msk.mxu1 (!%p328_p3), %vm632_vm0, %v4458_v0 }
   0xf   : > { %v4596_v40 = vld [vmem:[%s5225_s5 + $0x20] sm:$0xf] (!%p328_p3)  ;;  %v477_v50 = vld [vmem:[%s5223_s3 + $0x10] sm:$0xf] (!%p328_p3)  ;;  %p3545_p11 = scmp.ne.s32.totalorder (!%p328_p3), %s4365_s24, 0 }
  0x10   : > { %s5239_s25 = smov (!%p398_p5, %s4369_s25), 1  ;;  %s5241_s10 = smov (!%p400_p6, %s3408_s10), 15  ;;  %v4601_v41 = vld [vmem:[%s5226_s6] ss:$0 sm:$0xff] }
  0x11   : > { %s3410_s14 = sshll.u32 %s5239_s25, 5  ;;  %s3409_s16 = sshll.u32 %s5241_s10, 1 }
  0x12   : > { %s404_s17 = sadd.s32 %s3410_s14, %s3409_s16  ;;  %s5243_s15 = smov (!%p410_p7, %s3413_s15), 0 }
  0x13   : > { %s3411_s19 = sshll.u32 %s404_s17, 3  ;;  %s5245_s18 = smov (!%p429_p8, %s3636_s18), 7 }
  0x14   : > { %s4473_s22 = scalar_lea.vmem %s5227_s7, %s3411_s19  ;;  %s3414_s23 = sshll.u32 %s5243_s15, 1 }
  0x15   : > { %p415_p9 = scmp.lt.s32.totalorder %s3414_s23, 15  ;;  %s3419_s8 = sshll.u32 %s5245_s18, 1 }
  0x16   : > { %p434_p10 = scmp.lt.s32.totalorder %s3419_s8, 15  ;;  %s4478_s10 = scalar_lea.vmem %s5220_s0, %s3411_s19 }
  0x17   : > { %s5247_s23 = smov (!%p415_p9, %s3414_s23), 15  ;;  %v4484_v2 = vld [vmem:[%s4478_s10] sm:$0xff]  ;;  %v4495_v13 = vld [vmem:[%s4478_s10 + $0x8] sm:$0xff]  ;;  %v4630_v48 = vld [vmem:[%s4478_s10 + $0x10] sm:$0xff] }
  0x18   : > { %s5249_s8 = smov (!%p434_p10, %s3419_s8), 15  ;;  %s3415_s11 = sshll.u32 %s5247_s23, 1  ;;  %v503_v16 = vrot.slane %v4484_v2, 1  ;;  %v532_v17 = vrot.slane %v4484_v2, 7  ;;  %v533_v22 = vrot.slane %v4495_v13, 7  ;;  %v571_v47 = vrot.slane %v4495_v13, 1 }
  0x19   : > { %s419_s12 = sadd.s32 %s3415_s11, %s3410_s14  ;;  %s3420_s13 = sshll.u32 %s5249_s8, 1  ;;  %v4633_v49 = vld [vmem:[%s4478_s10 + $0x18] sm:$0xff]  ;;  %v504_v53 = vrot.slane %v4630_v48, 1  ;;  %v4658_v55 = vld [vmem:[%s4478_s10 + $0x20] sm:$0xff]  ;;  %v4661_v56 = vld [vmem:[%s4478_s10 + $0x28] sm:$0xff] }
  0x1a   : > { %s3417_s16 = sshll.u32 %s419_s12, 3  ;;  %s438_s17 = sadd.s32 %s3420_s13, %s3410_s14  ;;  %v4546_v31 = vsel %vm525_vm1, %v503_v16, %v532_v17  ;;  %v4607_v42 = vsel %vm525_vm1, %v532_v17, %v533_v22  ;;  %v4650_v52 = vsel %vm566_vm3, %v503_v16, %v571_v47  ;;  %v573_v54 = vrot.slane %v4633_v49, 1  ;;  %v4681_v62 = vld [vmem:[%s4478_s10 + $0x30] sm:$0xff]  ;;  %v4684_v63 = vld [vmem:[%s4478_s10 + $0x38] sm:$0xff] }
  0x1b   : > { %s421_s15 = scalar_lea.vmem %s5221_s1, %s3417_s16  ;;  %s3422_s18 = sshll.u32 %s438_s17, 3  ;;  %v4670_v57 = vsel %vm566_vm3, %v571_v47, %v533_v22  ;;  %v536_v58 = vrot.slane %v4633_v49, 7  ;;  %v505_v60 = vrot.slane %v4658_v55, 1  ;;  %v575_v61 = vrot.slane %v4661_v56, 1 }
  0x1c   : > { %v465_v3 = vld [vmem:[%s421_s15] sm:$0xff]  ;;  %v466_v4 = vld [vmem:[%s421_s15 + $0x8] sm:$0xff]  ;;  %v4486_v5 = vld [vmem:[%s421_s15 + $0x10] sm:$0xff]  ;;  %s4500_s23 = scalar_lea.vmem %s5222_s2, %s3422_s18  ;;  %v4676_v59 = vsel %vm566_vm3, %v504_v53, %v573_v54  ;;  %v541_v17 = vrot.slane %v4681_v62, 7 }
  0x1d   : > { %v501_v6 = vrot.slane %v465_v3, 1  ;;  %v526_v7 = vrot.slane %v465_v3, 7  ;;  %v527_v8 = vrot.slane %v466_v4, 7  ;;  %v502_v9 = vrot.slane %v4486_v5, 1  ;;  %v4489_v10 = vld [vmem:[%s421_s15 + $0x18] sm:$0xff]  ;;  %3837 = vmatprep.mubr.msk.f32.mxu1 %vm607_vm2, %v465_v3  ;;  %v4507_v18 = vld [vmem:[%s4500_s23 + $0x10] sm:$0xff] }
  0x1e   : > { %v529_v11 = vrot.slane %v4486_v5, 7  ;;  %v530_v12 = vrot.slane %v4489_v10, 7  ;;  %v4510_v19 = vld [vmem:[%s4500_s23 + $0x18] sm:$0xff]  ;;  %v567_v23 = vrot.slane %v466_v4, 1  ;;  %v508_v27 = vrot.slane %v4507_v18, 1  ;;  %3838 = vmatmul.mubr.msk.f32.vlgmr.msra.gmra.mrb[0].mxu1 %vm607_vm2, %v466_v4 }
  0x1f   : > { %v558_v14 = vsel %vm525_vm1, %v501_v6, %v526_v7  ;;  %v528_v15 = vsel %vm525_vm1, %v526_v7, %v527_v8  ;;  %v547_v28 = vrot.slane %v4507_v18, 7  ;;  %v548_v29 = vrot.slane %v4510_v19, 7  ;;  %3840 = vmatprep.mubr.msk.f32.mxu1 %vm607_vm2, %v4486_v5  ;;  %4142 = vmatpush3.msk.msra.mxu1 %vm632_vm0, %v4458_v0 }
  0x20   : > { %3857 = vmatprep.mubr.msk.f32.mxu0 %vm607_vm2, %v558_v14  ;;  %v4514_v20 = vsel %vm525_vm1, %v502_v9, %v529_v11  ;;  %v4535_v26 = vsel %vm525_vm1, %v529_v11, %v530_v12  ;;  %v568_v43 = vsel %vm566_vm3, %v501_v6, %v567_v23  ;;  %v569_v44 = vrot.slane %v4489_v10, 1 }
  0x21   : > { %3858 = vmatmul.mubr.msk.f32.vlgmr.msra.gmra.mrb[0].mxu0 %vm607_vm2, %v528_v15  ;;  %v4568_v35 = vsel %vm525_vm1, %v508_v27, %v547_v28  ;;  %v4573_v36 = vsel %vm525_vm1, %v547_v28, %v548_v29  ;;  %v599_v45 = vsel %vm566_vm3, %v567_v23, %v527_v8  ;;  %v535_v0 = vrot.slane %v4630_v48, 7  ;;  %v478_v28 = vld [vmem:[%s5223_s3 + $0x14] sm:$0xf] }
  0x22   : > { %3876 = vmatpush3.msk.msra.mxu0 %vm632_vm0, %v475_v1  ;;  %3860 = vmatprep.mubr.msk.f32.mxu0 %vm607_vm2, %v4514_v20  ;;  %v4626_v46 = vsel %vm566_vm3, %v502_v9, %v569_v44  ;;  %v4647_v51 = vsel %vm566_vm3, %v569_v44, %v530_v12  ;;  %v4694_v1 = vsel %vm566_vm3, %v573_v54, %v536_v58  ;;  %v539_v3 = vrot.slane %v4661_v56, 7 }
  0x23   : > { %3895 = vmatprep.subr.msk.mxu0 %vm632_vm0, %v476_v21  ;;  %3841 = vmatmul.mubr.msk.f32.gmra.mrb[2].mxu1 %vm607_vm2, %v4489_v10  ;;  %v4700_v4 = vsel %vm566_vm3, %v505_v60, %v575_v61  ;;  %v506_v6 = vrot.slane %v4681_v62, 1  ;;  %v577_v7 = vrot.slane %v4684_v63, 1  ;;  %v4707_v8 = vsel %vm525_vm1, %v504_v53, %v535_v0 }
  0x24   : > { %3843 = vmatprep.mubr.msk.f32.mxu1 %vm607_vm2, %v4484_v2  ;;  %v538_v9 = vrot.slane %v4658_v55, 7  ;;  %v4715_v11 = vsel %vm566_vm3, %v575_v61, %v539_v3  ;;  %v542_v12 = vrot.slane %v4684_v63, 7  ;;  %v4724_v15 = vsel %vm525_vm1, %v535_v0, %v536_v58  ;;  %v481_v58 = vld [vmem:[%s5223_s3 + $0x20] sm:$0xf] }
  0x25   : > { %3861 = vmatmul.mubr.msk.f32.gmra.mrb[2].mxu0 %vm607_vm2, %v4535_v26  ;;  %v4721_v14 = vsel %vm566_vm3, %v506_v6, %v577_v7  ;;  %v4747_v23 = vsel %vm525_vm1, %v506_v6, %v541_v17 }
  0x26   : > { %3863 = vmatprep.mubr.msk.f32.mxu0 %vm607_vm2, %v4546_v31  ;;  %v4729_v16 = vsel %vm525_vm1, %v505_v60, %v538_v9  ;;  %v4742_v22 = vsel %vm525_vm1, %v538_v9, %v539_v3  ;;  %v4756_v24 = vsel %vm525_vm1, %v541_v17, %v542_v12 }
  0x27   : > { %3844 = vmatmul.mubr.msk.f32.gmra.mrb[4].mxu1 %vm607_vm2, %v4495_v13 }
  0x28   : > { %3846 = vmatprep.mubr.msk.f32.mxu1 %vm607_vm2, %v4630_v48 }
  0x29   : > { %3864 = vmatmul.mubr.msk.f32.gmra.mrb[4].mxu0 %vm607_vm2, %v4607_v42 }
  0x2a   : > { %3877 = vmatprep.mubr.msk.f32.mxu0 %vm607_vm2, %v568_v43 }
  0x2b   : > { %3847 = vmatmul.mubr.msk.f32.gmra.mrb[6].mxu1 %vm607_vm2, %v4633_v49 }
  0x2c   : > { %3849 = vmatprep.mubr.msk.f32.mxu1 %vm607_vm2, %v4658_v55 }
  0x2d   : > { %3878 = vmatmul.mubr.msk.f32.vlgmr.msra.gmra.mrb[0].mxu0 %vm607_vm2, %v599_v45  ;;  %v4784_v45 = vld [vmem:[%s4500_s23 + $0x8] sm:$0xff] }
  0x2e   : > { %3896 = vmatpush3.msk.msra.mxu0 %vm632_vm0, %v476_v21  ;;  %3880 = vmatprep.mubr.msk.f32.mxu0 %vm607_vm2, %v4626_v46  ;;  %v4737_v21 = vsel %vm566_vm3, %v577_v7, %v542_v12  ;;  %v545_v53 = vrot.slane %v4784_v45, 7 }
  0x2f   : > { %3915 = vmatprep.subr.msk.mxu0 %vm632_vm0, %v477_v50  ;;  %3850 = vmatmul.mubr.msk.f32.gmra.mrb[8].mxu1 %vm607_vm2, %v4661_v56 }
  0x30   : > { %3852 = vmatprep.mubr.msk.f32.mxu1 %vm607_vm2, %v4681_v62 }
  0x31   : > { %3881 = vmatmul.mubr.msk.f32.gmra.mrb[2].mxu0 %vm607_vm2, %v4647_v51 }
  0x32   : > { %3883 = vmatprep.mubr.msk.f32.mxu0 %vm607_vm2, %v4650_v52 }
  0x33   : > { %3853 = vmatmul.mubr.msk.f32.gmra.mrb[10].mxu1 %vm607_vm2, %v4684_v63 }
  0x34   : > { %3866 = vmatprep.mubr.msk.f32.mxu1 %vm607_vm2, %v4707_v8 }
  0x35   : > { %3884 = vmatmul.mubr.msk.f32.gmra.mrb[4].mxu0 %vm607_vm2, %v4670_v57 }
  0x36   : > { %3886 = vmatprep.mubr.msk.f32.mxu0 %vm607_vm2, %v4676_v59 }
  0x37   : > { %3867 = vmatmul.mubr.msk.f32.vlgmr.msra.gmra.mrb[6].mxu1 %vm607_vm2, %v4724_v15 }
  0x38   : > { %3869 = vmatprep.mubr.msk.f32.mxu1 %vm607_vm2, %v4729_v16 }
  0x39   : > { %3887 = vmatmul.mubr.msk.f32.gmra.mrb[6].mxu0 %vm607_vm2, %v4694_v1 }
  0x3a   : > { %3889 = vmatprep.mubr.msk.f32.mxu0 %vm607_vm2, %v4700_v4 }
  0x3b   : > { %3870 = vmatmul.mubr.msk.f32.gmra.mrb[8].mxu1 %vm607_vm2, %v4742_v22 }
  0x3c   : > { %3872 = vmatprep.mubr.msk.f32.mxu1 %vm607_vm2, %v4747_v23 }
  0x3d   : > { %3890 = vmatmul.mubr.msk.f32.gmra.mrb[8].mxu0 %vm607_vm2, %v4715_v11 }
  0x3e   : > { %3892 = vmatprep.mubr.msk.f32.mxu0 %vm607_vm2, %v4721_v14 }
  0x3f   : > { %3873 = vmatmul.mubr.msk.f32.gmra.mrb[10].mxu1 %vm607_vm2, %v4756_v24 }
  0x41   : > { %3893 = vmatmul.mubr.msk.f32.gmra.mrb[10].mxu0 %vm607_vm2, %v4737_v21 }
  0x42   : > { %3897 = vmatprep.mubr.msk.f32.mxu0 %vm607_vm2, %v4514_v20  ;;  %v4774_v20 = vld [vmem:[%s4500_s23] sm:$0xff] }
  0x43   : > { %v507_v43 = vrot.slane %v4774_v20, 1  ;;  %v544_v44 = vrot.slane %v4774_v20, 7 }
  0x45   : > { %3898 = vmatmul.mubr.msk.f32.vlgmr.msra.gmra.mrb[0].mxu0 %vm607_vm2, %v4535_v26  ;;  %v581_v26 = vrot.slane %v4510_v19, 1  ;;  %v564_v54 = vsel %vm525_vm1, %v507_v43, %v544_v44 }
  0x46   : > { %3916 = vmatpush3.msk.msra.mxu0 %vm632_vm0, %v477_v50  ;;  %3900 = vmatprep.mubr.msk.f32.mxu0 %vm607_vm2, %v4546_v31 }
  0x47   : > { %3935 = vmatprep.subr.msk.mxu0 %vm632_vm0, %v478_v28  ;;  %v4789_v47 = vsel %vm566_vm3, %v508_v27, %v581_v26  ;;  %v4794_v50 = vsel %vm566_vm3, %v581_v26, %v548_v29  ;;  %v546_v27 = vsel %vm525_vm1, %v544_v44, %v545_v53  ;;  %v479_v29 = vld [vmem:[%s5223_s3 + $0x18] sm:$0xf] }
  0x49   : > { %3901 = vmatmul.mubr.msk.f32.gmra.mrb[2].mxu0 %vm607_vm2, %v4607_v42 }
  0x4a   : > { %3903 = vmatprep.mubr.msk.f32.mxu0 %vm607_vm2, %v4707_v8 }
  0x4d   : > { %3904 = vmatmul.mubr.msk.f32.gmra.mrb[4].mxu0 %vm607_vm2, %v4724_v15 }
  0x4e   : > { %3906 = vmatprep.mubr.msk.f32.mxu0 %vm607_vm2, %v4729_v16 }
  0x51   : > { %3907 = vmatmul.mubr.msk.f32.gmra.mrb[6].mxu0 %vm607_vm2, %v4742_v22 }
  0x52   : > { %3909 = vmatprep.mubr.msk.f32.mxu0 %vm607_vm2, %v4747_v23 }
  0x55   : > { %3910 = vmatmul.mubr.msk.f32.gmra.mrb[8].mxu0 %vm607_vm2, %v4756_v24 }
  0x56   : > { %3912 = vmatprep.mubr.msk.f32.mxu0 %vm607_vm2, %v564_v54 }
  0x59   : > { %3913 = vmatmul.mubr.msk.f32.gmra.mrb[10].mxu0 %vm607_vm2, %v546_v27 }
  0x5a   : > { %3917 = vmatprep.mubr.msk.f32.mxu0 %vm607_vm2, %v4486_v5  ;;  %v480_v5 = vld [vmem:[%s5223_s3 + $0x1c] sm:$0xf] }
  0x5d   : > { %3918 = vmatmul.mubr.msk.f32.vlgmr.msra.gmra.mrb[0].mxu0 %vm607_vm2, %v4489_v10  ;;  %v579_v10 = vrot.slane %v4784_v45, 1 }
  0x5e   : > { %3936 = vmatpush3.msk.msra.mxu0 %vm632_vm0, %v478_v28  ;;  %3920 = vmatprep.mubr.msk.f32.mxu0 %vm607_vm2, %v4484_v2 }
  0x5f   : > { %3955 = vmatprep.subr.msk.mxu0 %vm632_vm0, %v479_v29 }
  0x61   : > { %3921 = vmatmul.mubr.msk.f32.gmra.mrb[2].mxu0 %vm607_vm2, %v4495_v13 }
  0x62   : > { %3923 = vmatprep.mubr.msk.f32.mxu0 %vm607_vm2, %v4630_v48 }
  0x65   : > { %3924 = vmatmul.mubr.msk.f32.gmra.mrb[4].mxu0 %vm607_vm2, %v4633_v49 }
  0x66   : > { %3926 = vmatprep.mubr.msk.f32.mxu0 %vm607_vm2, %v4658_v55 }
  0x69   : > { %3927 = vmatmul.mubr.msk.f32.gmra.mrb[6].mxu0 %vm607_vm2, %v4661_v56 }
  0x6a   : > { %3929 = vmatprep.mubr.msk.f32.mxu0 %vm607_vm2, %v4681_v62 }
  0x6d   : > { %3930 = vmatmul.mubr.msk.f32.gmra.mrb[8].mxu0 %vm607_vm2, %v4684_v63 }
  0x6e   : > { %3932 = vmatprep.mubr.msk.f32.mxu0 %vm607_vm2, %v4774_v20 }
  0x71   : > { %3933 = vmatmul.mubr.msk.f32.gmra.mrb[10].mxu0 %vm607_vm2, %v4784_v45 }
  0x72   : > { %3937 = vmatprep.mubr.msk.f32.mxu0 %vm607_vm2, %v4626_v46  ;;  %v580_v46 = vsel %vm566_vm3, %v507_v43, %v579_v10 }
  0x75   : > { %3938 = vmatmul.mubr.msk.f32.vlgmr.msra.gmra.mrb[0].mxu0 %vm607_vm2, %v4647_v51  ;;  %v605_v51 = vsel %vm566_vm3, %v579_v10, %v545_v53 }
  0x76   : > { %3956 = vmatpush3.msk.msra.mxu0 %vm632_vm0, %v479_v29  ;;  %3940 = vmatprep.mubr.msk.f32.mxu0 %vm607_vm2, %v4650_v52 }
  0x77   : > { %3975 = vmatprep.subr.msk.mxu0 %vm632_vm0, %v480_v5 }
  0x79   : > { %3941 = vmatmul.mubr.msk.f32.gmra.mrb[2].mxu0 %vm607_vm2, %v4670_v57 }
  0x7a   : > { %3943 = vmatprep.mubr.msk.f32.mxu0 %vm607_vm2, %v4676_v59 }
  0x7d   : > { %3944 = vmatmul.mubr.msk.f32.gmra.mrb[4].mxu0 %vm607_vm2, %v4694_v1 }
  0x7e   : > { %3946 = vmatprep.mubr.msk.f32.mxu0 %vm607_vm2, %v4700_v4 }
  0x81   : > { %3947 = vmatmul.mubr.msk.f32.gmra.mrb[6].mxu0 %vm607_vm2, %v4715_v11 }
  0x82   : > { %3949 = vmatprep.mubr.msk.f32.mxu0 %vm607_vm2, %v4721_v14 }
  0x85   : > { %3950 = vmatmul.mubr.msk.f32.gmra.mrb[8].mxu0 %vm607_vm2, %v4737_v21 }
  0x86   : > { %3952 = vmatprep.mubr.msk.f32.mxu0 %vm607_vm2, %v580_v46 }
  0x89   : > { %3953 = vmatmul.mubr.msk.f32.gmra.mrb[10].mxu0 %vm607_vm2, %v605_v51 }
  0x8a   : > { %3957 = vmatprep.mubr.msk.f32.mxu0 %vm607_vm2, %v4546_v31 }
  0x8d   : > { %3958 = vmatmul.mubr.msk.f32.vlgmr.msra.gmra.mrb[0].mxu0 %vm607_vm2, %v4607_v42 }
  0x8e   : > { %3976 = vmatpush3.msk.msra.mxu0 %vm632_vm0, %v480_v5  ;;  %3960 = vmatprep.mubr.msk.f32.mxu0 %vm607_vm2, %v4707_v8 }
  0x8f   : > { %3995 = vmatprep.subr.msk.mxu0 %vm632_vm0, %v481_v58 }
  0x91   : > { %3961 = vmatmul.mubr.msk.f32.gmra.mrb[2].mxu0 %vm607_vm2, %v4724_v15 }
  0x92   : > { %3963 = vmatprep.mubr.msk.f32.mxu0 %vm607_vm2, %v4729_v16 }
  0x95   : > { %3964 = vmatmul.mubr.msk.f32.gmra.mrb[4].mxu0 %vm607_vm2, %v4742_v22 }
  0x96   : > { %3966 = vmatprep.mubr.msk.f32.mxu0 %vm607_vm2, %v4747_v23 }
  0x99   : > { %3967 = vmatmul.mubr.msk.f32.gmra.mrb[6].mxu0 %vm607_vm2, %v4756_v24 }
  0x9a   : > { %3969 = vmatprep.mubr.msk.f32.mxu0 %vm607_vm2, %v564_v54 }
  0x9d   : > { %3970 = vmatmul.mubr.msk.f32.gmra.mrb[8].mxu0 %vm607_vm2, %v546_v27 }
  0x9e   : > { %3972 = vmatprep.mubr.msk.f32.mxu0 %vm607_vm2, %v4568_v35 }
  0xa1   : > { %3973 = vmatmul.mubr.msk.f32.gmra.mrb[10].mxu0 %vm607_vm2, %v4573_v36 }
  0xa2   : > { %3977 = vmatprep.mubr.msk.f32.mxu0 %vm607_vm2, %v4484_v2 }
  0xa5   : > { %3978 = vmatmul.mubr.msk.f32.vlgmr.msra.gmra.mrb[0].mxu0 %vm607_vm2, %v4495_v13 }
  0xa6   : > { %3996 = vmatpush3.msk.msra.mxu0 %vm632_vm0, %v481_v58  ;;  %3980 = vmatprep.mubr.msk.f32.mxu0 %vm607_vm2, %v4630_v48 }
  0xa9   : > { %3981 = vmatmul.mubr.msk.f32.gmra.mrb[2].mxu0 %vm607_vm2, %v4633_v49 }
  0xaa   : > { %3983 = vmatprep.mubr.msk.f32.mxu0 %vm607_vm2, %v4658_v55 }
  0xad   : > { %3984 = vmatmul.mubr.msk.f32.gmra.mrb[4].mxu0 %vm607_vm2, %v4661_v56 }
  0xae   : > { %3986 = vmatprep.mubr.msk.f32.mxu0 %vm607_vm2, %v4681_v62 }
  0xb1   : > { %3987 = vmatmul.mubr.msk.f32.gmra.mrb[6].mxu0 %vm607_vm2, %v4684_v63 }
  0xb2   : > { %3989 = vmatprep.mubr.msk.f32.mxu0 %vm607_vm2, %v4774_v20 }
  0xb5   : > { %3990 = vmatmul.mubr.msk.f32.gmra.mrb[8].mxu0 %vm607_vm2, %v4784_v45 }
  0xb6   : > { %3992 = vmatprep.mubr.msk.f32.mxu0 %vm607_vm2, %v4507_v18 }
  0xb9   : > { %3993 = vmatmul.mubr.msk.f32.gmra.mrb[10].mxu0 %vm607_vm2, %v4510_v19 }
  0xba   : > { %3997 = vmatprep.mubr.msk.f32.mxu0 %vm607_vm2, %v4650_v52 }
  0xbd   : > { %3998 = vmatmul.mubr.msk.f32.vlgmr.msra.gmra.mrb[0].mxu0 %vm607_vm2, %v4670_v57 }
  0xbe   : > { %4000 = vmatprep.mubr.msk.f32.mxu0 %vm607_vm2, %v4676_v59 }
  0xc1   : > { %4001 = vmatmul.mubr.msk.f32.gmra.mrb[2].mxu0 %vm607_vm2, %v4694_v1  ;;  %v3544_v1 = vld [vmem:[%s5224_s4] ss:$0 sm:$0xff] }
  0xc2   : > { %4003 = vmatprep.mubr.msk.f32.mxu0 %vm607_vm2, %v4700_v4 }
  0xc5   : > { %4004 = vmatmul.mubr.msk.f32.gmra.mrb[4].mxu0 %vm607_vm2, %v4715_v11 }
  0xc6   : > { %4006 = vmatprep.mubr.msk.f32.mxu0 %vm607_vm2, %v4721_v14 }
  0xc9   : > { %4007 = vmatmul.mubr.msk.f32.gmra.mrb[6].mxu0 %vm607_vm2, %v4737_v21 }
  0xca   : > { %4009 = vmatprep.mubr.msk.f32.mxu0 %vm607_vm2, %v580_v46 }
  0xcd   : > { %4010 = vmatmul.mubr.msk.f32.gmra.mrb[8].mxu0 %vm607_vm2, %v605_v51 }
  0xce   : > { %4012 = vmatprep.mubr.msk.f32.mxu0 %vm607_vm2, %v4789_v47 }
  0xd1   : > { %4013 = vmatmul.mubr.msk.f32.gmra.mrb[10].mxu0 %vm607_vm2, %v4794_v50 }
  0xf1   : > { %v3839_v18 = vpop.f32.mrb[0].mxu1 }
  0xf2   : > { %v702_v19 = vpop.f32.mrb[1].mxu1 }
  0xf6   : > { %v3842_v31 = vpop.f32.mrb[2].mxu1 }
  0xf7   : > { %v712_v35 = vpop.f32.mrb[3].mxu1 }
  0xfa   : > { %v3845_v36 = vpop.f32.mrb[4].mxu1 }
  0xfb   : > { %v722_v42 = vpop.f32.mrb[5].mxu1 }
 0x10a   : > { %v3868_v52 = vpop.f32.mrb[6].mxu1 }
 0x10b   : > { %v890_v57 = vpop.f32.mrb[7].mxu1 }
 0x10e   : > { %v3871_v59 = vpop.f32.mrb[8].mxu1 }
 0x10f   : > { %v900_v60 = vpop.f32.mrb[9].mxu1 }
 0x112   : > { %v3874_v61 = vpop.f32.mrb[10].mxu1 }
 0x113   : > { %v910_v0 = vpop.f32.mrb[11].mxu1 }
 0x190   : > { %v3999_v3 = vpop.f32.mrb[0].mxu0 }
 0x191   : > { %v4143_v4 = vadd.f32 %v3999_v3, %v3839_v18  ;;  %v1886_v6 = vpop.f32.mrb[1].mxu0 }
 0x192   : > { %v4144_v7 = vadd.f32 %v1886_v6, %v702_v19 }
 0x193   : > { %v1964_v8 = vadd.f32 %v4143_v4, %v3544_v1 }
 0x194   : > { %v1963_v9 = vadd.f32 %v4144_v7, %v3544_v1  ;;  %v4002_v11 = vpop.f32.mrb[2].mxu0 }
 0x195   : > { %v1976_v12 = vmax.f32 %v1964_v8, 0.0  ;;  %v4145_v14 = vadd.f32 %v4002_v11, %v3842_v31  ;;  %v1896_v15 = vpop.f32.mrb[3].mxu0 }
 0x196   : > { %v1975_v16 = vmax.f32 %v1963_v9, 0.0  ;;  %v4146_v17 = vadd.f32 %v1896_v15, %v712_v35 }
 0x197   : > { %1988 = vst.msk [vmem:[#allocation2 + $0x8] sm:$0xff] %vm607_vm2, %v1976_v12  ;;  %v1966_v21 = vadd.f32 %v4145_v14, %v3544_v1 }
 0x198   : > { %1987 = vst.msk [vmem:[#allocation2] sm:$0xff] %vm607_vm2, %v1975_v16  ;;  %v1965_v22 = vadd.f32 %v4146_v17, %v3544_v1  ;;  %v4005_v23 = vpop.f32.mrb[4].mxu0 }
 0x199   : > { %v1978_v24 = vmax.f32 %v1966_v21, 0.0  ;;  %v4147_v28 = vadd.f32 %v4005_v23, %v3845_v36  ;;  %v1906_v20 = vpop.f32.mrb[5].mxu0 }
 0x19a   : > { %v1977_v26 = vmax.f32 %v1965_v22, 0.0  ;;  %v4148_v43 = vadd.f32 %v1906_v20, %v722_v42 }
 0x19b   : > { %1990 = vst.msk [vmem:[#allocation2 + $0x18] sm:$0xff] %vm607_vm2, %v1978_v24  ;;  %v1968_v44 = vadd.f32 %v4147_v28, %v3544_v1 }
 0x19c   : > { %1989 = vst.msk [vmem:[#allocation2 + $0x10] sm:$0xff] %vm607_vm2, %v1977_v26  ;;  %v1967_v45 = vadd.f32 %v4148_v43, %v3544_v1  ;;  %v4008_v47 = vpop.f32.mrb[6].mxu0 }
 0x19d   : > { %v1980_v50 = vmax.f32 %v1968_v44, 0.0  ;;  %v4149_v53 = vadd.f32 %v4008_v47, %v3868_v52  ;;  %v1916_v54 = vpop.f32.mrb[7].mxu0 }
 0x19e   : > { %v1979_v27 = vmax.f32 %v1967_v45, 0.0  ;;  %v4150_v29 = vadd.f32 %v1916_v54, %v890_v57 }
 0x19f   : > { %1992 = vst.msk [vmem:[#allocation2 + $0x28] sm:$0xff] %vm607_vm2, %v1980_v50  ;;  %v1970_v5 = vadd.f32 %v4149_v53, %v3544_v1 }
 0x1a0   : > { %1991 = vst.msk [vmem:[#allocation2 + $0x20] sm:$0xff] %vm607_vm2, %v1979_v27  ;;  %v1969_v10 = vadd.f32 %v4150_v29, %v3544_v1  ;;  %v4011_v46 = vpop.f32.mrb[8].mxu0 }
 0x1a1   : > { %v1982_v51 = vmax.f32 %v1970_v5, 0.0  ;;  %v4151_v58 = vadd.f32 %v4011_v46, %v3871_v59  ;;  %v1926_v18 = vpop.f32.mrb[9].mxu0 }
 0x1a2   : > { %v1981_v19 = vmax.f32 %v1969_v10, 0.0  ;;  %v4152_v31 = vadd.f32 %v1926_v18, %v900_v60 }
 0x1a3   : > { %1994 = vst.msk [vmem:[#allocation2 + $0x38] sm:$0xff] %vm607_vm2, %v1982_v51  ;;  %v1972_v35 = vadd.f32 %v4151_v58, %v3544_v1 }
 0x1a4   : > { %1993 = vst.msk [vmem:[#allocation2 + $0x30] sm:$0xff] %vm607_vm2, %v1981_v19  ;;  %v1971_v36 = vadd.f32 %v4152_v31, %v3544_v1  ;;  %v4014_v42 = vpop.f32.mrb[10].mxu0 }
 0x1a5   : > { %v1984_v52 = vmax.f32 %v1972_v35, 0.0  ;;  %v4153_v57 = vadd.f32 %v4014_v42, %v3874_v61  ;;  %v1936_v3 = vpop.f32.mrb[11].mxu0 }
 0x1a6   : > { %v1983_v4 = vmax.f32 %v1971_v36, 0.0  ;;  %v4154_v6 = vadd.f32 %v1936_v3, %v910_v0  ;;  %2002 = sbr.rel (%p3545_p11) target bundleno = 429 (0x1ad), region = 52  ;;  %v2005_v61 = vld [vmem:[#allocation2 + $0x28] sm:$0xff] (!%p3545_p11) }
 0x1a7   : > { %1996 = vst.msk [vmem:[#allocation2 + $0x48] sm:$0xff] %vm607_vm2, %v1984_v52  ;;  %v1974_v7 = vadd.f32 %v4153_v57, %v3544_v1  ;;  %v2004_v9 = vld [vmem:[#allocation2 + $0x20] sm:$0xff] (!%p3545_p11)  ;;  %2007 = vst.msk [vmem:[#allocation2 + $0x8] sm:$0xff] (!%p3545_p11), %vm607_vm2, %v2005_v61 }
 0x1a8   : > { %1995 = vst.msk [vmem:[#allocation2 + $0x40] sm:$0xff] %vm607_vm2, %v1983_v4  ;;  %v1973_v59 = vadd.f32 %v4154_v6, %v3544_v1  ;;  %2006 = vst.msk [vmem:[#allocation2] sm:$0xff] (!%p3545_p11), %vm607_vm2, %v2004_v9 }
 0x1a9   : > { %v1986_v8 = vmax.f32 %v1974_v7, 0.0 }
 0x1aa   : > { %v1985_v60 = vmax.f32 %v1973_v59, 0.0 }
 0x1ab   : > { %1998 = vst.msk [vmem:[#allocation2 + $0x58] sm:$0xff] %vm607_vm2, %v1986_v8 }
 0x1ac   : > { %1997 = vst.msk [vmem:[#allocation2 + $0x50] sm:$0xff] %vm607_vm2, %v1985_v60 }
 0x1ad PF: > { %p3546_p12 = scmp.ne.s32.totalorder %s4365_s24, 3 }
 0x1ae   : > { %v2013_v0 = vld [vmem:[#allocation2 + $0x30] sm:$0xff] (!%p3546_p12)  ;;  %v2014_v1 = vld [vmem:[#allocation2 + $0x38] sm:$0xff] (!%p3546_p12) }
 0x1af   : > { %2011 = sbr.rel (%p3546_p12) target bundleno = 438 (0x1b6), region = 56  ;;  %2016 = vst.msk [vmem:[#allocation2 + $0x50] sm:$0xff] (!%p3546_p12), %vm607_vm2, %v2013_v0  ;;  %2017 = vst.msk [vmem:[#allocation2 + $0x58] sm:$0xff] (!%p3546_p12), %vm607_vm2, %v2014_v1 }
 0x1b6 PF: > { %4015 = vmatprep.subr.msk.mxu1 %vm632_vm0, %v4543_v30  ;;  %v2018_v11 = vld [vmem:[#allocation2] sm:$0xff]  ;;  %v2019_v12 = vld [vmem:[#allocation2 + $0x8] sm:$0xff]  ;;  %v4963_v14 = vld [vmem:[#allocation2 + $0x10] sm:$0xff] }
 0x1b7   : > { %4016 = vmatpush3.msk.msra.mxu1 %vm632_vm0, %v4543_v30  ;;  %4017 = vmatprep.mubr.msk.f32.mxu1 %vm607_vm2, %v2018_v11  ;;  %v4975_v15 = vld [vmem:[#allocation2 + $0x18] sm:$0xff]  ;;  %v4977_v16 = vld [vmem:[#allocation2 + $0x20] sm:$0xff]  ;;  %v4985_v30 = vld [vmem:[#allocation2 + $0x28] sm:$0xff]  ;;  %v2054_v21 = vrot.slane %v2018_v11, 7  ;;  %v2055_v22 = vrot.slane %v2019_v12, 7  ;;  %v2037_v28 = vrot.slane %v4963_v14, 1 }
 0x1b8   : > { %4018 = vmatmul.mubr.msk.f32.vlgmr.msra.gmra.mrb[12].mxu1 %vm607_vm2, %v2019_v12  ;;  %4029 = vmatprep.subr.msk.mxu1 %vm632_vm0, %v4527_v25  ;;  %v4987_v17 = vld [vmem:[#allocation2 + $0x30] sm:$0xff]  ;;  %v4993_v23 = vld [vmem:[#allocation2 + $0x38] sm:$0xff]  ;;  %v2057_v20 = vrot.slane %v4963_v14, 7  ;;  %v2058_v43 = vrot.slane %v4975_v15, 7  ;;  %v2038_v45 = vrot.slane %v4977_v16, 1  ;;  %v2060_v47 = vrot.slane %v4977_v16, 7 }
 0x1b9   : > { %4030 = vmatpush3.msk.msra.mxu1 %vm632_vm0, %v4527_v25  ;;  %4020 = vmatprep.mubr.msk.f32.mxu1 %vm607_vm2, %v4963_v14  ;;  %v2036_v25 = vrot.slane %v2018_v11, 1  ;;  %v2056_v26 = vsel %vm525_vm1, %v2054_v21, %v2055_v22  ;;  %v2061_v53 = vrot.slane %v4985_v30, 7  ;;  %v2039_v27 = vrot.slane %v4987_v17, 1  ;;  %v2026_v4 = vld [vmem:[#allocation2 + $0x40] sm:$0xff]  ;;  %v2027_v59 = vld [vmem:[#allocation2 + $0x48] sm:$0xff]  ;;  %v2028_v61 = vld [vmem:[#allocation2 + $0x50] sm:$0xff] }
 0x1ba   : > { %4043 = vmatprep.subr.msk.mxu1 %vm632_vm0, %v4552_v32  ;;  %v2079_v44 = vsel %vm525_vm1, %v2037_v28, %v2057_v20  ;;  %v2059_v50 = vsel %vm525_vm1, %v2057_v20, %v2058_v43  ;;  %v5013_v54 = vsel %vm525_vm1, %v2038_v45, %v2060_v47  ;;  %v2063_v29 = vrot.slane %v4987_v17, 7  ;;  %v2029_v11 = vld [vmem:[#allocation2 + $0x58] sm:$0xff] }
 0x1bb   : > { %v2078_v24 = vsel %vm525_vm1, %v2036_v25, %v2054_v21  ;;  %v2064_v5 = vrot.slane %v4993_v23, 7  ;;  %v2084_v46 = vrot.slane %v2019_v12, 1  ;;  %v2086_v18 = vrot.slane %v4975_v15, 1 }
 0x1bc   : > { %4021 = vmatmul.mubr.msk.f32.gmra.mrb[14].mxu1 %vm607_vm2, %v4975_v15  ;;  %v5027_v10 = vsel %vm525_vm1, %v2039_v27, %v2063_v29  ;;  %v2088_v35 = vrot.slane %v4985_v30, 1  ;;  %v2090_v52 = vrot.slane %v4993_v23, 1  ;;  %v2040_v6 = vrot.slane %v2026_v4, 1 }
 0x1bd   : > { %4023 = vmatprep.mubr.msk.f32.mxu1 %vm607_vm2, %v4977_v16  ;;  %v5034_v51 = vsel %vm525_vm1, %v2063_v29, %v2064_v5  ;;  %v2085_v58 = vsel %vm566_vm3, %v2036_v25, %v2084_v46  ;;  %v2108_v19 = vsel %vm566_vm3, %v2084_v46, %v2055_v22  ;;  %v2087_v31 = vsel %vm566_vm3, %v2037_v28, %v2086_v18 }
 0x1be   : > { %v2109_v36 = vsel %vm566_vm3, %v2086_v18, %v2058_v43  ;;  %v5050_v42 = vsel %vm566_vm3, %v2038_v45, %v2088_v35  ;;  %v5059_v57 = vsel %vm566_vm3, %v2088_v35, %v2061_v53  ;;  %v5069_v3 = vsel %vm566_vm3, %v2090_v52, %v2064_v5 }
 0x1bf   : > { %v2066_v7 = vrot.slane %v2026_v4, 7  ;;  %v2067_v8 = vrot.slane %v2027_v59, 7  ;;  %v2041_v0 = vrot.slane %v2028_v61, 1  ;;  %v2069_v1 = vrot.slane %v2028_v61, 7 }
 0x1c0   : > { %4024 = vmatmul.mubr.msk.f32.gmra.mrb[16].mxu1 %vm607_vm2, %v4985_v30  ;;  %v2070_v12 = vrot.slane %v2029_v11, 7 }
 0x1c1   : > { %4026 = vmatprep.mubr.msk.f32.mxu1 %vm607_vm2, %v4987_v17  ;;  %v2082_v60 = vsel %vm525_vm1, %v2040_v6, %v2066_v7 }
 0x1c4   : > { %4027 = vmatmul.mubr.msk.f32.gmra.mrb[18].mxu1 %vm607_vm2, %v4993_v23 }
 0x1c5   : > { %4031 = vmatprep.mubr.msk.f32.mxu1 %vm607_vm2, %v2078_v24 }
 0x1c8   : > { %4032 = vmatmul.mubr.msk.f32.vlgmr.msra.gmra.mrb[12].mxu1 %vm607_vm2, %v2056_v26 }
 0x1c9   : > { %4044 = vmatpush3.msk.msra.mxu1 %vm632_vm0, %v4552_v32  ;;  %4034 = vmatprep.mubr.msk.f32.mxu1 %vm607_vm2, %v2079_v44  ;;  %v5023_v32 = vsel %vm525_vm1, %v2060_v47, %v2061_v53 }
 0x1ca   : > { %4057 = vmatprep.subr.msk.mxu1 %vm632_vm0, %v4557_v33 }
 0x1cc   : > { %4035 = vmatmul.mubr.msk.f32.gmra.mrb[14].mxu1 %vm607_vm2, %v2059_v50 }
 0x1cd   : > { %4037 = vmatprep.mubr.msk.f32.mxu1 %vm607_vm2, %v5013_v54 }
 0x1d0   : > { %4038 = vmatmul.mubr.msk.f32.gmra.mrb[16].mxu1 %vm607_vm2, %v5023_v32 }
 0x1d1   : > { %4040 = vmatprep.mubr.msk.f32.mxu1 %vm607_vm2, %v5027_v10 }
 0x1d4   : > { %4041 = vmatmul.mubr.msk.f32.gmra.mrb[18].mxu1 %vm607_vm2, %v5034_v51 }
 0x1d5   : > { %4045 = vmatprep.mubr.msk.f32.mxu1 %vm607_vm2, %v2085_v58 }
 0x1d8   : > { %4046 = vmatmul.mubr.msk.f32.vlgmr.msra.gmra.mrb[12].mxu1 %vm607_vm2, %v2108_v19 }
 0x1d9   : > { %4058 = vmatpush3.msk.msra.mxu1 %vm632_vm0, %v4557_v33  ;;  %4048 = vmatprep.mubr.msk.f32.mxu1 %vm607_vm2, %v2087_v31  ;;  %v5062_v33 = vsel %vm566_vm3, %v2039_v27, %v2090_v52 }
 0x1da   : > { %4071 = vmatprep.subr.msk.mxu1 %vm632_vm0, %v4562_v34 }
 0x1dc   : > { %4049 = vmatmul.mubr.msk.f32.gmra.mrb[14].mxu1 %vm607_vm2, %v2109_v36 }
 0x1dd   : > { %4051 = vmatprep.mubr.msk.f32.mxu1 %vm607_vm2, %v5050_v42 }
 0x1e0   : > { %4052 = vmatmul.mubr.msk.f32.gmra.mrb[16].mxu1 %vm607_vm2, %v5059_v57 }
 0x1e1   : > { %4054 = vmatprep.mubr.msk.f32.mxu1 %vm607_vm2, %v5062_v33 }
 0x1e4   : > { %4055 = vmatmul.mubr.msk.f32.gmra.mrb[18].mxu1 %vm607_vm2, %v5069_v3 }
 0x1e5   : > { %4059 = vmatprep.mubr.msk.f32.mxu1 %vm607_vm2, %v2079_v44 }
 0x1e8   : > { %4060 = vmatmul.mubr.msk.f32.vlgmr.msra.gmra.mrb[12].mxu1 %vm607_vm2, %v2059_v50 }
 0x1e9   : > { %4072 = vmatpush3.msk.msra.mxu1 %vm632_vm0, %v4562_v34  ;;  %4062 = vmatprep.mubr.msk.f32.mxu1 %vm607_vm2, %v5013_v54  ;;  %v2068_v34 = vsel %vm525_vm1, %v2066_v7, %v2067_v8 }
 0x1ea   : > { %4085 = vmatprep.subr.msk.mxu1 %vm632_vm0, %v4578_v37 }
 0x1ec   : > { %4063 = vmatmul.mubr.msk.f32.gmra.mrb[14].mxu1 %vm607_vm2, %v5023_v32 }
 0x1ed   : > { %4065 = vmatprep.mubr.msk.f32.mxu1 %vm607_vm2, %v5027_v10 }
 0x1f0   : > { %4066 = vmatmul.mubr.msk.f32.gmra.mrb[16].mxu1 %vm607_vm2, %v5034_v51 }
 0x1f1   : > { %4068 = vmatprep.mubr.msk.f32.mxu1 %vm607_vm2, %v2082_v60 }
 0x1f4   : > { %4069 = vmatmul.mubr.msk.f32.gmra.mrb[18].mxu1 %vm607_vm2, %v2068_v34 }
 0x1f5   : > { %4073 = vmatprep.mubr.msk.f32.mxu1 %vm607_vm2, %v4963_v14  ;;  %v2083_v14 = vsel %vm525_vm1, %v2041_v0, %v2069_v1 }
 0x1f8   : > { %4074 = vmatmul.mubr.msk.f32.vlgmr.msra.gmra.mrb[12].mxu1 %vm607_vm2, %v4975_v15 }
 0x1f9   : > { %4086 = vmatpush3.msk.msra.mxu1 %vm632_vm0, %v4578_v37  ;;  %4076 = vmatprep.mubr.msk.f32.mxu1 %vm607_vm2, %v4977_v16  ;;  %v2092_v37 = vrot.slane %v2027_v59, 1 }
 0x1fa   : > { %4099 = vmatprep.subr.msk.mxu1 %vm632_vm0, %v4583_v38 }
 0x1fb   : > { %v2093_v9 = vsel %vm566_vm3, %v2040_v6, %v2092_v37 }
 0x1fc   : > { %4077 = vmatmul.mubr.msk.f32.gmra.mrb[14].mxu1 %vm607_vm2, %v4985_v30 }
 0x1fd   : > { %4079 = vmatprep.mubr.msk.f32.mxu1 %vm607_vm2, %v4987_v17 }
 0x200   : > { %4080 = vmatmul.mubr.msk.f32.gmra.mrb[16].mxu1 %vm607_vm2, %v4993_v23 }
 0x201   : > { %4082 = vmatprep.mubr.msk.f32.mxu1 %vm607_vm2, %v2026_v4 }
 0x204   : > { %4083 = vmatmul.mubr.msk.f32.gmra.mrb[18].mxu1 %vm607_vm2, %v2027_v59 }
 0x205   : > { %4087 = vmatprep.mubr.msk.f32.mxu1 %vm607_vm2, %v2087_v31 }
 0x208   : > { %4088 = vmatmul.mubr.msk.f32.vlgmr.msra.gmra.mrb[12].mxu1 %vm607_vm2, %v2109_v36 }
 0x209   : > { %4100 = vmatpush3.msk.msra.mxu1 %vm632_vm0, %v4583_v38  ;;  %4090 = vmatprep.mubr.msk.f32.mxu1 %vm607_vm2, %v5050_v42  ;;  %v2112_v38 = vsel %vm566_vm3, %v2092_v37, %v2067_v8 }
 0x20a   : > { %4113 = vmatprep.subr.msk.mxu1 %vm632_vm0, %v4588_v39 }
 0x20c   : > { %4091 = vmatmul.mubr.msk.f32.gmra.mrb[14].mxu1 %vm607_vm2, %v5059_v57 }
 0x20d   : > { %4093 = vmatprep.mubr.msk.f32.mxu1 %vm607_vm2, %v5062_v33 }
 0x210   : > { %4094 = vmatmul.mubr.msk.f32.gmra.mrb[16].mxu1 %vm607_vm2, %v5069_v3 }
 0x211   : > { %4096 = vmatprep.mubr.msk.f32.mxu1 %vm607_vm2, %v2093_v9 }
 0x214   : > { %4097 = vmatmul.mubr.msk.f32.gmra.mrb[18].mxu1 %vm607_vm2, %v2112_v38 }
 0x215   : > { %4101 = vmatprep.mubr.msk.f32.mxu1 %vm607_vm2, %v5013_v54 }
 0x218   : > { %4102 = vmatmul.mubr.msk.f32.vlgmr.msra.gmra.mrb[12].mxu1 %vm607_vm2, %v5023_v32 }
 0x219   : > { %4114 = vmatpush3.msk.msra.mxu1 %vm632_vm0, %v4588_v39  ;;  %4104 = vmatprep.mubr.msk.f32.mxu1 %vm607_vm2, %v5027_v10  ;;  %v2071_v39 = vsel %vm525_vm1, %v2069_v1, %v2070_v12 }
 0x21a   : > { %4127 = vmatprep.subr.msk.mxu1 %vm632_vm0, %v4596_v40 }
 0x21c   : > { %4105 = vmatmul.mubr.msk.f32.gmra.mrb[14].mxu1 %vm607_vm2, %v5034_v51 }
 0x21d   : > { %4107 = vmatprep.mubr.msk.f32.mxu1 %vm607_vm2, %v2082_v60 }
 0x220   : > { %4108 = vmatmul.mubr.msk.f32.gmra.mrb[16].mxu1 %vm607_vm2, %v2068_v34 }
 0x221   : > { %4110 = vmatprep.mubr.msk.f32.mxu1 %vm607_vm2, %v2083_v14 }
 0x224   : > { %4111 = vmatmul.mubr.msk.f32.gmra.mrb[18].mxu1 %vm607_vm2, %v2071_v39 }
 0x225   : > { %4115 = vmatprep.mubr.msk.f32.mxu1 %vm607_vm2, %v4977_v16 }
 0x228   : > { %4116 = vmatmul.mubr.msk.f32.vlgmr.msra.gmra.mrb[12].mxu1 %vm607_vm2, %v4985_v30 }
 0x229   : > { %4128 = vmatpush3.msk.msra.mxu1 %vm632_vm0, %v4596_v40  ;;  %4118 = vmatprep.mubr.msk.f32.mxu1 %vm607_vm2, %v4987_v17  ;;  %v2094_v40 = vrot.slane %v2029_v11, 1 }
 0x22b   : > { %v2095_v15 = vsel %vm566_vm3, %v2041_v0, %v2094_v40  ;;  %v2113_v16 = vsel %vm566_vm3, %v2094_v40, %v2070_v12 }
 0x22c   : > { %4119 = vmatmul.mubr.msk.f32.gmra.mrb[14].mxu1 %vm607_vm2, %v4993_v23 }
 0x22d   : > { %4121 = vmatprep.mubr.msk.f32.mxu1 %vm607_vm2, %v2026_v4 }
 0x230   : > { %4122 = vmatmul.mubr.msk.f32.gmra.mrb[16].mxu1 %vm607_vm2, %v2027_v59 }
 0x231   : > { %4124 = vmatprep.mubr.msk.f32.mxu1 %vm607_vm2, %v2028_v61 }
 0x234   : > { %4125 = vmatmul.mubr.msk.f32.gmra.mrb[18].mxu1 %vm607_vm2, %v2029_v11 }
 0x235   : > { %4129 = vmatprep.mubr.msk.f32.mxu1 %vm607_vm2, %v5050_v42 }
 0x238   : > { %4130 = vmatmul.mubr.msk.f32.vlgmr.msra.gmra.mrb[12].mxu1 %vm607_vm2, %v5059_v57 }
 0x239   : > { %4132 = vmatprep.mubr.msk.f32.mxu1 %vm607_vm2, %v5062_v33 }
 0x23c   : > { %4133 = vmatmul.mubr.msk.f32.gmra.mrb[14].mxu1 %vm607_vm2, %v5069_v3 }
 0x23d   : > { %4135 = vmatprep.mubr.msk.f32.mxu1 %vm607_vm2, %v2093_v9 }
 0x240   : > { %4136 = vmatmul.mubr.msk.f32.gmra.mrb[16].mxu1 %vm607_vm2, %v2112_v38 }
 0x241   : > { %4138 = vmatprep.mubr.msk.f32.mxu1 %vm607_vm2, %v2095_v15 }
 0x244   : > { %4139 = vmatmul.mubr.msk.f32.gmra.mrb[18].mxu1 %vm607_vm2, %v2113_v16 }
 0x30b   : > { %v4131_v30 = vpop.f32.mrb[12].mxu1 }
 0x30c   : > { %v3233_v17 = vadd.f32 %v4131_v30, %v4601_v41  ;;  %v3179_v25 = vpop.f32.mrb[13].mxu1 }
 0x30d   : > { %v3232_v21 = vadd.f32 %v4601_v41, %v3179_v25 }
 0x30e   : > { %v3241_v22 = vadd.f32 %v3233_v17, %v4495_v13 }
 0x30f   : > { %v3240_v23 = vadd.f32 %v3232_v21, %v4484_v2  ;;  %v4134_v24 = vpop.f32.mrb[14].mxu1 }
 0x310   : > { %3249 = vst.msk [vmem:[%s4473_s22 + $0x8] sm:$0xff] %vm607_vm2, %v3241_v22  ;;  %v3235_v28 = vadd.f32 %v4134_v24, %v4601_v41  ;;  %v3189_v20 = vpop.f32.mrb[15].mxu1 }
 0x311   : > { %3248 = vst.msk [vmem:[%s4473_s22] sm:$0xff] %vm607_vm2, %v3240_v23  ;;  %v3234_v26 = vadd.f32 %v4601_v41, %v3189_v20 }
 0x312   : > { %v3243_v43 = vadd.f32 %v3235_v28, %v4633_v49 }
 0x313   : > { %v3242_v44 = vadd.f32 %v3234_v26, %v4630_v48  ;;  %v4137_v45 = vpop.f32.mrb[16].mxu1 }
 0x314   : > { %3251 = vst.msk [vmem:[%s4473_s22 + $0x18] sm:$0xff] %vm607_vm2, %v3243_v43  ;;  %v3237_v2 = vadd.f32 %v4137_v45, %v4601_v41  ;;  %v3199_v13 = vpop.f32.mrb[17].mxu1 }
 0x315   : > { %3250 = vst.msk [vmem:[%s4473_s22 + $0x10] sm:$0xff] %vm607_vm2, %v3242_v44  ;;  %v3236_v47 = vadd.f32 %v4601_v41, %v3199_v13 }
 0x316   : > { %v3245_v50 = vadd.f32 %v3237_v2, %v4661_v56 }
 0x317   : > { %v3244_v53 = vadd.f32 %v3236_v47, %v4658_v55  ;;  %v4140_v54 = vpop.f32.mrb[18].mxu1 }
 0x318   : > { %3253 = vst.msk [vmem:[%s4473_s22 + $0x28] sm:$0xff] %vm607_vm2, %v3245_v50  ;;  %v3239_v48 = vadd.f32 %v4140_v54, %v4601_v41  ;;  %v3209_v49 = vpop.f32.mrb[19].mxu1 }
 0x319   : > { %3252 = vst.msk [vmem:[%s4473_s22 + $0x20] sm:$0xff] %vm607_vm2, %v3244_v53  ;;  %v3238_v27 = vadd.f32 %v4601_v41, %v3209_v49 }
 0x31a   : > { %v3247_v29 = vadd.f32 %v3239_v48, %v4684_v63 }
 0x31b   : > { %v3246_v32 = vadd.f32 %v3238_v27, %v4681_v62 }
 0x31c   : > { %3255 = vst.msk [vmem:[%s4473_s22 + $0x38] sm:$0xff] %vm607_vm2, %v3247_v29 }
 0x31d   : > { %3254 = vst.msk [vmem:[%s4473_s22 + $0x30] sm:$0xff] %vm607_vm2, %v3246_v32 }
 0x31e PF: > { %s17_s28 = sadd.s32 1, %s4381_s28   ;;  %s5228_s24 = smov %s4373_s26 }
 0x31f   : > { %p14_p13 = scmp.ge.s32.totalorder %s17_s28, 10   ;;  %s5229_s25 = smov %s4377_s27 }
 0x320   : > { %s5230_s26 = smov %s5233_s29  ;;  %s5231_s27 = smov %s5237_s30 }
 0x321   :  { %16 = sbr.rel (!%p14_p13) target bundleno = 3 (0x3), region = 95 }

</bundles_post_ra>
